<compile_context>
chip_gen: v6e
topology: v6e:2x2x1
jax: 0.10.0
libtpu: 0.0.40
codegen_flags: <defaults>
</compile_context>

<pallas_src>
import jax
import jax.numpy as jnp
from jax.experimental import pallas as pl
from jax.experimental.pallas import tpu as pltpu

K = 7          # conv kernel size
PAD = (K - 1) // 2


def spatial_gate(x, conv_w, bn_scale, bn_bias, *, donate_x=False):
    """x: (N, C, H, W); conv_w: (1, 2, K, K); bn_scale/bn_bias: scalars."""
    N, C, H, W = x.shape
    HW = H * W
    OFF = PAD * W + PAD                     # flat-index reach of the (-3,-3) tap

    # ---- wrapper-side layout / constant prep -------------------------------
    x3 = x.reshape(N, C, HW)                                     # lane-dense

    # Weight layout for per-sublane FMA columns:
    #   w3[dj, c*K + di, 0] = conv_w[0, c, di, dj]
    w3 = jnp.transpose(conv_w[0].astype(jnp.float32), (2, 0, 1)).reshape(
        K, 2 * K, 1)
    bn = jnp.stack([jnp.asarray(bn_scale, jnp.float32),
                    jnp.asarray(bn_bias, jnp.float32)])          # (2,)

    # ---- block sizing: batch several images per grid step at small shapes --
    itemsize = jnp.dtype(x.dtype).itemsize
    img_bytes = C * HW * itemsize
    NB = 1
    for cand in range(1, N + 1):
        if N % cand == 0 and cand <= 8 and cand * img_bytes <= (1 << 20):
            NB = cand
    block_bytes = NB * img_bytes

    # ---- kernel -------------------------------------------------------------
    def kernel(w_ref, bn_ref, x_ref, o_ref):
        # w_ref : VMEM (K, 2K, 1) f32   w_ref[dj, c*K+di, 0] = conv_w[0,c,di,dj]
        # bn_ref: SMEM (2,)      f32   folded BatchNorm (scale, bias)
        # x_ref : VMEM (NB, C, HW)     input block, lane-dense
        # o_ref : VMEM (NB, C, HW)

        # Column-validity masks (depend only on the kw offset dj): the flat-
        # shift trick wraps across rows where the source column leaves [0, W);
        # those lanes are zeroed.  Built once per grid step from a lane iota.
        t = jax.lax.broadcasted_iota(jnp.int32, (1, HW), 1)
        col = jax.lax.rem(t, jnp.full((1, HW), W, jnp.int32))
        masks = []
        for dj in range(K):
            d = dj - PAD
            ok = jnp.logical_and(col + d >= 0, col + d < W)
            masks.append(jnp.where(ok, 1.0, 0.0).astype(jnp.float32))

        bn_s = bn_ref[0]
        bn_b = bn_ref[1]
        inv_c = jnp.float32(1.0 / C)
        zpad = jnp.zeros((1, OFF), jnp.float32)

        for b in range(NB):
            xv = x_ref[b]                                         # (C, HW)

            # --- ChannelPool: max & mean over channels (f32 accumulation,
            #     no full-tile f32 temp) ---
            ch_max = jnp.max(xv, axis=0, keepdims=True).astype(jnp.float32)
            ch_mean = jnp.sum(xv, axis=0, keepdims=True,
                              dtype=jnp.float32) * inv_c

            # --- zero-padded flat pooled maps (values in vregs) ---
            full_max = jnp.concatenate([zpad, ch_max, zpad], axis=1)
            full_mean = jnp.concatenate([zpad, ch_mean, zpad], axis=1)

            # --- sublane-pack the 2 channels x 7 kh taps: row (c*K + di)
            #     holds the pooled map pre-shifted by di*W.  14 lane shifts
            #     total (hoisted out of the dj loop). ---
            rows = []
            for fm in (full_max, full_mean):
                for di in range(K):
                    s = di * W
                    rows.append(fm[:, s:s + HW + 2 * PAD])
            S = jnp.concatenate(rows, axis=0)                     # (2K, HW+2P)

            # --- 7 kw taps: each one (2K, HW) FMA against a per-sublane
            #     weight column; single cross-sublane reduce at the end. ---
            acc = jnp.zeros((2 * K, HW), jnp.float32)
            for dj in range(K):
                wcol = w_ref[dj]                                  # (2K, 1) f32
                acc = acc + (wcol * S[:, dj:dj + HW]) * masks[dj]
            conv = jnp.sum(acc, axis=0, keepdims=True)            # (1, HW)

            # --- folded BatchNorm affine + sigmoid (EUP exp; exact recip to
            #     hold the 1e-5 tolerance) ---
            y = conv * bn_s + bn_b
            scale = pl.reciprocal(1.0 + jnp.exp(-y), approx=False)

            # --- gate the input: multiply in f32, single cast at the store ---
            o_ref[b] = (xv.astype(jnp.float32) * scale).astype(o_ref.dtype)

    # ---- pallas_call --------------------------------------------------------
    vmem_limit = int(min(
        100 << 20,
        2 * 2 * block_bytes              # double-buffered input + output blocks
        + 2 * (K * 2 * K * 128 * 4)      # weight tile (lane-padded)
        + (16 << 20)))                   # value spills / internal slack

    cost = pl.CostEstimate(
        flops=int(N * HW * (3 * C + 4 * K * K + C + 8)),
        transcendentals=int(N * HW),
        bytes_accessed=int(2 * N * C * HW * itemsize + 2 * K * K * 4 + 8))

    out3 = pl.pallas_call(
        kernel,
        out_shape=jax.ShapeDtypeStruct((N, C, HW), x.dtype),
        grid_spec=pltpu.PrefetchScalarGridSpec(
            num_scalar_prefetch=0,
            grid=(N // NB,),                                      # NB images / step
            in_specs=[
                pl.BlockSpec((K, 2 * K, 1), lambda n: (0, 0, 0)),   # conv weights
                pl.BlockSpec(memory_space=pltpu.MemorySpace.SMEM),  # bn affine
                pl.BlockSpec((NB, C, HW), lambda n: (n, 0, 0)),     # x lane-dense
            ],
            out_specs=pl.BlockSpec((NB, C, HW), lambda n: (n, 0, 0)),
        ),
        compiler_params=pltpu.CompilerParams(
            dimension_semantics=("parallel",),
            vmem_limit_bytes=vmem_limit),
        cost_estimate=cost,
        input_output_aliases=({2: 0} if donate_x else {}),
    )(w3, bn, x3)

    return out3.reshape(N, C, H, W)


def spatial_gate_ref(x, conv_w, bn_scale, bn_bias):
    """Pure-JAX reference (matches PyTorch SpatialGate in eval mode)."""
    ch_max = jnp.max(x, axis=1, keepdims=True)
    ch_mean = jnp.mean(x, axis=1, keepdims=True)
    xc = jnp.concatenate([ch_max, ch_mean], axis=1)               # (N,2,H,W)
    y = jax.lax.conv_general_dilated(
        xc, conv_w, window_strides=(1, 1), padding="SAME",
        dimension_numbers=("NCHW", "OIHW", "NCHW"),
        precision=jax.lax.Precision.HIGHEST)
    y = y * bn_scale + bn_bias
    return x * jax.nn.sigmoid(y)


if __name__ == "__main__":
    key = jax.random.PRNGKey(0)
    kx, kw = jax.random.split(key)

    N, C, H, W = 2, 4, 16, 16
    x = jax.random.normal(kx, (N, C, H, W), dtype=jnp.float32)

    # Conv2d(2, 1, 7, padding=3, bias=False) weight, deterministic init.
    conv_w = 0.1 * jax.random.normal(kw, (1, 2, K, K), dtype=jnp.float32)

    # BatchNorm2d(1) eval mode, default stats: gamma=1, beta=0, mean=0, var=1.
    eps = 1e-5
    bn_scale = 1.0 / jnp.sqrt(1.0 + eps)
    bn_bias = 0.0

    # Reference computed first so x can be donated to the kernel (in-place gate).
    ref = spatial_gate_ref(x, conv_w, bn_scale, bn_bias)
    ref = jax.block_until_ready(ref)

    out = spatial_gate(x, conv_w, bn_scale, bn_bias, donate_x=True)
    out = jax.block_until_ready(out)

    assert out.shape == (N, C, H, W)
    assert jnp.allclose(out, ref, atol=1e-5, rtol=1e-5), (
        float(jnp.max(jnp.abs(out - ref))))

    print("KERNEL_OK")
</pallas_src>

<mosaic_0001>
module attributes {stable_mosaic.version = 11 : i64} {
  func.func @kernel(%arg0: i32, %arg1: memref<7x14x1xf32, #tpu.memory_space<vmem>>, %arg2: memref<2xf32, #tpu.memory_space<smem>>, %arg3: memref<2x4x256xf32, #tpu.memory_space<vmem>>, %arg4: memref<2x4x256xf32, #tpu.memory_space<vmem>>) attributes {dimension_semantics = [#tpu.dimension_semantics<parallel>], iteration_bounds = array<i64: 1>, scalar_prefetch = 0 : i64, scratch_operands = 0 : i64, tpu.core_type = #tpu.core_type<tc>, window_params = [{pipeline_mode = #tpu.pipeline_mode<synchronous>, transform_indices = @transform_0, window_bounds = array<i64: 7, 14, 1>}, {transform_indices = @transform_1, window_bounds = array<i64: 2>}, {transform_indices = @transform_2, window_bounds = array<i64: 2, 4, 256>}, {transform_indices = @transform_3, window_bounds = array<i64: 2, 4, 256>}]} {
    %0 = tpu.iota {dimensions = array<i32: 1>} : vector<1x256xi32>
    %c16_i32 = arith.constant 16 : i32
    %1 = vector.broadcast %c16_i32 : i32 to vector<1x256xi32>
    %2 = arith.remsi %0, %1 : vector<1x256xi32>
    %c-3_i32 = arith.constant -3 : i32
    %3 = vector.broadcast %c-3_i32 : i32 to vector<1x256xi32>
    %4 = arith.addi %2, %3 : vector<1x256xi32>
    %c0_i32 = arith.constant 0 : i32
    %5 = vector.broadcast %c0_i32 : i32 to vector<1x256xi32>
    %6 = arith.cmpi sge, %4, %5 : vector<1x256xi32>
    %c-3_i32_0 = arith.constant -3 : i32
    %7 = vector.broadcast %c-3_i32_0 : i32 to vector<1x256xi32>
    %8 = arith.addi %2, %7 : vector<1x256xi32>
    %c16_i32_1 = arith.constant 16 : i32
    %9 = vector.broadcast %c16_i32_1 : i32 to vector<1x256xi32>
    %10 = arith.cmpi slt, %8, %9 : vector<1x256xi32>
    %11 = arith.andi %6, %10 : vector<1x256xi1>
    %cst = arith.constant 1.000000e+00 : f32
    %cst_2 = arith.constant 0.000000e+00 : f32
    %12 = vector.broadcast %cst : f32 to vector<1x256xf32>
    %13 = vector.broadcast %cst_2 : f32 to vector<1x256xf32>
    %14 = arith.select %11, %12, %13 : vector<1x256xi1>, vector<1x256xf32>
    %c-2_i32 = arith.constant -2 : i32
    %15 = vector.broadcast %c-2_i32 : i32 to vector<1x256xi32>
    %16 = arith.addi %2, %15 : vector<1x256xi32>
    %c0_i32_3 = arith.constant 0 : i32
    %17 = vector.broadcast %c0_i32_3 : i32 to vector<1x256xi32>
    %18 = arith.cmpi sge, %16, %17 : vector<1x256xi32>
    %c-2_i32_4 = arith.constant -2 : i32
    %19 = vector.broadcast %c-2_i32_4 : i32 to vector<1x256xi32>
    %20 = arith.addi %2, %19 : vector<1x256xi32>
    %c16_i32_5 = arith.constant 16 : i32
    %21 = vector.broadcast %c16_i32_5 : i32 to vector<1x256xi32>
    %22 = arith.cmpi slt, %20, %21 : vector<1x256xi32>
    %23 = arith.andi %18, %22 : vector<1x256xi1>
    %cst_6 = arith.constant 1.000000e+00 : f32
    %cst_7 = arith.constant 0.000000e+00 : f32
    %24 = vector.broadcast %cst_6 : f32 to vector<1x256xf32>
    %25 = vector.broadcast %cst_7 : f32 to vector<1x256xf32>
    %26 = arith.select %23, %24, %25 : vector<1x256xi1>, vector<1x256xf32>
    %c-1_i32 = arith.constant -1 : i32
    %27 = vector.broadcast %c-1_i32 : i32 to vector<1x256xi32>
    %28 = arith.addi %2, %27 : vector<1x256xi32>
    %c0_i32_8 = arith.constant 0 : i32
    %29 = vector.broadcast %c0_i32_8 : i32 to vector<1x256xi32>
    %30 = arith.cmpi sge, %28, %29 : vector<1x256xi32>
    %c-1_i32_9 = arith.constant -1 : i32
    %31 = vector.broadcast %c-1_i32_9 : i32 to vector<1x256xi32>
    %32 = arith.addi %2, %31 : vector<1x256xi32>
    %c16_i32_10 = arith.constant 16 : i32
    %33 = vector.broadcast %c16_i32_10 : i32 to vector<1x256xi32>
    %34 = arith.cmpi slt, %32, %33 : vector<1x256xi32>
    %35 = arith.andi %30, %34 : vector<1x256xi1>
    %cst_11 = arith.constant 1.000000e+00 : f32
    %cst_12 = arith.constant 0.000000e+00 : f32
    %36 = vector.broadcast %cst_11 : f32 to vector<1x256xf32>
    %37 = vector.broadcast %cst_12 : f32 to vector<1x256xf32>
    %38 = arith.select %35, %36, %37 : vector<1x256xi1>, vector<1x256xf32>
    %c0_i32_13 = arith.constant 0 : i32
    %39 = vector.broadcast %c0_i32_13 : i32 to vector<1x256xi32>
    %40 = arith.addi %2, %39 : vector<1x256xi32>
    %c0_i32_14 = arith.constant 0 : i32
    %41 = vector.broadcast %c0_i32_14 : i32 to vector<1x256xi32>
    %42 = arith.cmpi sge, %40, %41 : vector<1x256xi32>
    %c0_i32_15 = arith.constant 0 : i32
    %43 = vector.broadcast %c0_i32_15 : i32 to vector<1x256xi32>
    %44 = arith.addi %2, %43 : vector<1x256xi32>
    %c16_i32_16 = arith.constant 16 : i32
    %45 = vector.broadcast %c16_i32_16 : i32 to vector<1x256xi32>
    %46 = arith.cmpi slt, %44, %45 : vector<1x256xi32>
    %47 = arith.andi %42, %46 : vector<1x256xi1>
    %cst_17 = arith.constant 1.000000e+00 : f32
    %cst_18 = arith.constant 0.000000e+00 : f32
    %48 = vector.broadcast %cst_17 : f32 to vector<1x256xf32>
    %49 = vector.broadcast %cst_18 : f32 to vector<1x256xf32>
    %50 = arith.select %47, %48, %49 : vector<1x256xi1>, vector<1x256xf32>
    %c1_i32 = arith.constant 1 : i32
    %51 = vector.broadcast %c1_i32 : i32 to vector<1x256xi32>
    %52 = arith.addi %2, %51 : vector<1x256xi32>
    %c0_i32_19 = arith.constant 0 : i32
    %53 = vector.broadcast %c0_i32_19 : i32 to vector<1x256xi32>
    %54 = arith.cmpi sge, %52, %53 : vector<1x256xi32>
    %c1_i32_20 = arith.constant 1 : i32
    %55 = vector.broadcast %c1_i32_20 : i32 to vector<1x256xi32>
    %56 = arith.addi %2, %55 : vector<1x256xi32>
    %c16_i32_21 = arith.constant 16 : i32
    %57 = vector.broadcast %c16_i32_21 : i32 to vector<1x256xi32>
    %58 = arith.cmpi slt, %56, %57 : vector<1x256xi32>
    %59 = arith.andi %54, %58 : vector<1x256xi1>
    %cst_22 = arith.constant 1.000000e+00 : f32
    %cst_23 = arith.constant 0.000000e+00 : f32
    %60 = vector.broadcast %cst_22 : f32 to vector<1x256xf32>
    %61 = vector.broadcast %cst_23 : f32 to vector<1x256xf32>
    %62 = arith.select %59, %60, %61 : vector<1x256xi1>, vector<1x256xf32>
    %c2_i32 = arith.constant 2 : i32
    %63 = vector.broadcast %c2_i32 : i32 to vector<1x256xi32>
    %64 = arith.addi %2, %63 : vector<1x256xi32>
    %c0_i32_24 = arith.constant 0 : i32
    %65 = vector.broadcast %c0_i32_24 : i32 to vector<1x256xi32>
    %66 = arith.cmpi sge, %64, %65 : vector<1x256xi32>
    %c2_i32_25 = arith.constant 2 : i32
    %67 = vector.broadcast %c2_i32_25 : i32 to vector<1x256xi32>
    %68 = arith.addi %2, %67 : vector<1x256xi32>
    %c16_i32_26 = arith.constant 16 : i32
    %69 = vector.broadcast %c16_i32_26 : i32 to vector<1x256xi32>
    %70 = arith.cmpi slt, %68, %69 : vector<1x256xi32>
    %71 = arith.andi %66, %70 : vector<1x256xi1>
    %cst_27 = arith.constant 1.000000e+00 : f32
    %cst_28 = arith.constant 0.000000e+00 : f32
    %72 = vector.broadcast %cst_27 : f32 to vector<1x256xf32>
    %73 = vector.broadcast %cst_28 : f32 to vector<1x256xf32>
    %74 = arith.select %71, %72, %73 : vector<1x256xi1>, vector<1x256xf32>
    %c3_i32 = arith.constant 3 : i32
    %75 = vector.broadcast %c3_i32 : i32 to vector<1x256xi32>
    %76 = arith.addi %2, %75 : vector<1x256xi32>
    %c0_i32_29 = arith.constant 0 : i32
    %77 = vector.broadcast %c0_i32_29 : i32 to vector<1x256xi32>
    %78 = arith.cmpi sge, %76, %77 : vector<1x256xi32>
    %c3_i32_30 = arith.constant 3 : i32
    %79 = vector.broadcast %c3_i32_30 : i32 to vector<1x256xi32>
    %80 = arith.addi %2, %79 : vector<1x256xi32>
    %c16_i32_31 = arith.constant 16 : i32
    %81 = vector.broadcast %c16_i32_31 : i32 to vector<1x256xi32>
    %82 = arith.cmpi slt, %80, %81 : vector<1x256xi32>
    %83 = arith.andi %78, %82 : vector<1x256xi1>
    %cst_32 = arith.constant 1.000000e+00 : f32
    %cst_33 = arith.constant 0.000000e+00 : f32
    %84 = vector.broadcast %cst_32 : f32 to vector<1x256xf32>
    %85 = vector.broadcast %cst_33 : f32 to vector<1x256xf32>
    %86 = arith.select %83, %84, %85 : vector<1x256xi1>, vector<1x256xf32>
    %c0 = arith.constant 0 : index
    %87 = memref.load %arg2[%c0] : memref<2xf32, #tpu.memory_space<smem>>
    %c1 = arith.constant 1 : index
    %88 = memref.load %arg2[%c1] : memref<2xf32, #tpu.memory_space<smem>>
    %cst_34 = arith.constant 0.000000e+00 : f32
    %89 = vector.broadcast %cst_34 : f32 to vector<1x51xf32>
    %c0_35 = arith.constant 0 : index
    %c0_36 = arith.constant 0 : index
    %c0_37 = arith.constant 0 : index
    %90 = vector.load %arg3[%c0_35, %c0_36, %c0_37] : memref<2x4x256xf32, #tpu.memory_space<vmem>>, vector<1x4x256xf32>
    %91 = vector.shape_cast %90 : vector<1x4x256xf32> to vector<4x256xf32>
    %cst_38 = arith.constant dense<0xFF800000> : vector<256xf32>
    %92 = vector.multi_reduction <maximumf>, %91, %cst_38 [0] : vector<4x256xf32> to vector<256xf32>
    %93 = vector.shape_cast %92 : vector<256xf32> to vector<1x256xf32>
    %cst_39 = arith.constant dense<0.000000e+00> : vector<256xf32>
    %94 = vector.multi_reduction <add>, %91, %cst_39 [0] : vector<4x256xf32> to vector<256xf32>
    %95 = vector.shape_cast %94 : vector<256xf32> to vector<1x256xf32>
    %cst_40 = arith.constant 2.500000e-01 : f32
    %96 = vector.broadcast %cst_40 : f32 to vector<1x256xf32>
    %97 = arith.mulf %95, %96 : vector<1x256xf32>
    %98 = tpu.concatenate %89, %93, %89 in 1 : vector<1x51xf32>, vector<1x256xf32>, vector<1x51xf32> -> vector<1x358xf32>
    %99 = tpu.concatenate %89, %97, %89 in 1 : vector<1x51xf32>, vector<1x256xf32>, vector<1x51xf32> -> vector<1x358xf32>
    %100 = vector.extract_strided_slice %98 {offsets = [0, 0], sizes = [1, 262], strides = [1, 1]} : vector<1x358xf32> to vector<1x262xf32>
    %101 = vector.extract_strided_slice %98 {offsets = [0, 16], sizes = [1, 262], strides = [1, 1]} : vector<1x358xf32> to vector<1x262xf32>
    %102 = vector.extract_strided_slice %98 {offsets = [0, 32], sizes = [1, 262], strides = [1, 1]} : vector<1x358xf32> to vector<1x262xf32>
    %103 = vector.extract_strided_slice %98 {offsets = [0, 48], sizes = [1, 262], strides = [1, 1]} : vector<1x358xf32> to vector<1x262xf32>
    %104 = vector.extract_strided_slice %98 {offsets = [0, 64], sizes = [1, 262], strides = [1, 1]} : vector<1x358xf32> to vector<1x262xf32>
    %105 = vector.extract_strided_slice %98 {offsets = [0, 80], sizes = [1, 262], strides = [1, 1]} : vector<1x358xf32> to vector<1x262xf32>
    %106 = vector.extract_strided_slice %98 {offsets = [0, 96], sizes = [1, 262], strides = [1, 1]} : vector<1x358xf32> to vector<1x262xf32>
    %107 = vector.extract_strided_slice %99 {offsets = [0, 0], sizes = [1, 262], strides = [1, 1]} : vector<1x358xf32> to vector<1x262xf32>
    %108 = vector.extract_strided_slice %99 {offsets = [0, 16], sizes = [1, 262], strides = [1, 1]} : vector<1x358xf32> to vector<1x262xf32>
    %109 = vector.extract_strided_slice %99 {offsets = [0, 32], sizes = [1, 262], strides = [1, 1]} : vector<1x358xf32> to vector<1x262xf32>
    %110 = vector.extract_strided_slice %99 {offsets = [0, 48], sizes = [1, 262], strides = [1, 1]} : vector<1x358xf32> to vector<1x262xf32>
    %111 = vector.extract_strided_slice %99 {offsets = [0, 64], sizes = [1, 262], strides = [1, 1]} : vector<1x358xf32> to vector<1x262xf32>
    %112 = vector.extract_strided_slice %99 {offsets = [0, 80], sizes = [1, 262], strides = [1, 1]} : vector<1x358xf32> to vector<1x262xf32>
    %113 = vector.extract_strided_slice %99 {offsets = [0, 96], sizes = [1, 262], strides = [1, 1]} : vector<1x358xf32> to vector<1x262xf32>
    %114 = tpu.concatenate %100, %101, %102, %103, %104, %105, %106, %107, %108, %109, %110, %111, %112, %113 in 0 : vector<1x262xf32>, vector<1x262xf32>, vector<1x262xf32>, vector<1x262xf32>, vector<1x262xf32>, vector<1x262xf32>, vector<1x262xf32>, vector<1x262xf32>, vector<1x262xf32>, vector<1x262xf32>, vector<1x262xf32>, vector<1x262xf32>, vector<1x262xf32>, vector<1x262xf32> -> vector<14x262xf32>
    %cst_41 = arith.constant 0.000000e+00 : f32
    %115 = vector.broadcast %cst_41 : f32 to vector<14x256xf32>
    %c0_42 = arith.constant 0 : index
    %c0_43 = arith.constant 0 : index
    %c0_44 = arith.constant 0 : index
    %116 = vector.load %arg1[%c0_42, %c0_43, %c0_44] : memref<7x14x1xf32, #tpu.memory_space<vmem>>, vector<1x14x1xf32>
    %117 = vector.shape_cast %116 : vector<1x14x1xf32> to vector<14x1xf32>
    %118 = vector.extract_strided_slice %114 {offsets = [0, 0], sizes = [14, 256], strides = [1, 1]} : vector<14x262xf32> to vector<14x256xf32>
    %119 = vector.broadcast %117 : vector<14x1xf32> to vector<14x256xf32>
    %120 = arith.mulf %119, %118 : vector<14x256xf32>
    %121 = vector.broadcast %14 : vector<1x256xf32> to vector<14x256xf32>
    %122 = arith.mulf %120, %121 : vector<14x256xf32>
    %123 = arith.addf %115, %122 : vector<14x256xf32>
    %c1_45 = arith.constant 1 : index
    %c0_46 = arith.constant 0 : index
    %c0_47 = arith.constant 0 : index
    %124 = vector.load %arg1[%c1_45, %c0_46, %c0_47] : memref<7x14x1xf32, #tpu.memory_space<vmem>>, vector<1x14x1xf32>
    %125 = vector.shape_cast %124 : vector<1x14x1xf32> to vector<14x1xf32>
    %126 = vector.extract_strided_slice %114 {offsets = [0, 1], sizes = [14, 256], strides = [1, 1]} : vector<14x262xf32> to vector<14x256xf32>
    %127 = vector.broadcast %125 : vector<14x1xf32> to vector<14x256xf32>
    %128 = arith.mulf %127, %126 : vector<14x256xf32>
    %129 = vector.broadcast %26 : vector<1x256xf32> to vector<14x256xf32>
    %130 = arith.mulf %128, %129 : vector<14x256xf32>
    %131 = arith.addf %123, %130 : vector<14x256xf32>
    %c2 = arith.constant 2 : index
    %c0_48 = arith.constant 0 : index
    %c0_49 = arith.constant 0 : index
    %132 = vector.load %arg1[%c2, %c0_48, %c0_49] : memref<7x14x1xf32, #tpu.memory_space<vmem>>, vector<1x14x1xf32>
    %133 = vector.shape_cast %132 : vector<1x14x1xf32> to vector<14x1xf32>
    %134 = vector.extract_strided_slice %114 {offsets = [0, 2], sizes = [14, 256], strides = [1, 1]} : vector<14x262xf32> to vector<14x256xf32>
    %135 = vector.broadcast %133 : vector<14x1xf32> to vector<14x256xf32>
    %136 = arith.mulf %135, %134 : vector<14x256xf32>
    %137 = vector.broadcast %38 : vector<1x256xf32> to vector<14x256xf32>
    %138 = arith.mulf %136, %137 : vector<14x256xf32>
    %139 = arith.addf %131, %138 : vector<14x256xf32>
    %c3 = arith.constant 3 : index
    %c0_50 = arith.constant 0 : index
    %c0_51 = arith.constant 0 : index
    %140 = vector.load %arg1[%c3, %c0_50, %c0_51] : memref<7x14x1xf32, #tpu.memory_space<vmem>>, vector<1x14x1xf32>
    %141 = vector.shape_cast %140 : vector<1x14x1xf32> to vector<14x1xf32>
    %142 = vector.extract_strided_slice %114 {offsets = [0, 3], sizes = [14, 256], strides = [1, 1]} : vector<14x262xf32> to vector<14x256xf32>
    %143 = vector.broadcast %141 : vector<14x1xf32> to vector<14x256xf32>
    %144 = arith.mulf %143, %142 : vector<14x256xf32>
    %145 = vector.broadcast %50 : vector<1x256xf32> to vector<14x256xf32>
    %146 = arith.mulf %144, %145 : vector<14x256xf32>
    %147 = arith.addf %139, %146 : vector<14x256xf32>
    %c4 = arith.constant 4 : index
    %c0_52 = arith.constant 0 : index
    %c0_53 = arith.constant 0 : index
    %148 = vector.load %arg1[%c4, %c0_52, %c0_53] : memref<7x14x1xf32, #tpu.memory_space<vmem>>, vector<1x14x1xf32>
    %149 = vector.shape_cast %148 : vector<1x14x1xf32> to vector<14x1xf32>
    %150 = vector.extract_strided_slice %114 {offsets = [0, 4], sizes = [14, 256], strides = [1, 1]} : vector<14x262xf32> to vector<14x256xf32>
    %151 = vector.broadcast %149 : vector<14x1xf32> to vector<14x256xf32>
    %152 = arith.mulf %151, %150 : vector<14x256xf32>
    %153 = vector.broadcast %62 : vector<1x256xf32> to vector<14x256xf32>
    %154 = arith.mulf %152, %153 : vector<14x256xf32>
    %155 = arith.addf %147, %154 : vector<14x256xf32>
    %c5 = arith.constant 5 : index
    %c0_54 = arith.constant 0 : index
    %c0_55 = arith.constant 0 : index
    %156 = vector.load %arg1[%c5, %c0_54, %c0_55] : memref<7x14x1xf32, #tpu.memory_space<vmem>>, vector<1x14x1xf32>
    %157 = vector.shape_cast %156 : vector<1x14x1xf32> to vector<14x1xf32>
    %158 = vector.extract_strided_slice %114 {offsets = [0, 5], sizes = [14, 256], strides = [1, 1]} : vector<14x262xf32> to vector<14x256xf32>
    %159 = vector.broadcast %157 : vector<14x1xf32> to vector<14x256xf32>
    %160 = arith.mulf %159, %158 : vector<14x256xf32>
    %161 = vector.broadcast %74 : vector<1x256xf32> to vector<14x256xf32>
    %162 = arith.mulf %160, %161 : vector<14x256xf32>
    %163 = arith.addf %155, %162 : vector<14x256xf32>
    %c6 = arith.constant 6 : index
    %c0_56 = arith.constant 0 : index
    %c0_57 = arith.constant 0 : index
    %164 = vector.load %arg1[%c6, %c0_56, %c0_57] : memref<7x14x1xf32, #tpu.memory_space<vmem>>, vector<1x14x1xf32>
    %165 = vector.shape_cast %164 : vector<1x14x1xf32> to vector<14x1xf32>
    %166 = vector.extract_strided_slice %114 {offsets = [0, 6], sizes = [14, 256], strides = [1, 1]} : vector<14x262xf32> to vector<14x256xf32>
    %167 = vector.broadcast %165 : vector<14x1xf32> to vector<14x256xf32>
    %168 = arith.mulf %167, %166 : vector<14x256xf32>
    %169 = vector.broadcast %86 : vector<1x256xf32> to vector<14x256xf32>
    %170 = arith.mulf %168, %169 : vector<14x256xf32>
    %171 = arith.addf %163, %170 : vector<14x256xf32>
    %cst_58 = arith.constant dense<0.000000e+00> : vector<256xf32>
    %172 = vector.multi_reduction <add>, %171, %cst_58 [0] : vector<14x256xf32> to vector<256xf32>
    %173 = vector.shape_cast %172 : vector<256xf32> to vector<1x256xf32>
    %174 = vector.broadcast %87 : f32 to vector<1x256xf32>
    %175 = arith.mulf %173, %174 : vector<1x256xf32>
    %176 = vector.broadcast %88 : f32 to vector<1x256xf32>
    %177 = arith.addf %175, %176 : vector<1x256xf32>
    %cst_59 = arith.constant 0.000000e+00 : f32
    %178 = vector.broadcast %cst_59 : f32 to vector<1x256xf32>
    %179 = arith.subf %178, %177 : vector<1x256xf32>
    %180 = math.exp %179 : vector<1x256xf32>
    %cst_60 = arith.constant 1.000000e+00 : f32
    %181 = vector.broadcast %cst_60 : f32 to vector<1x256xf32>
    %182 = arith.addf %181, %180 : vector<1x256xf32>
    %183 = tpu.reciprocal %182 : vector<1x256xf32> -> vector<1x256xf32>
    %184 = vector.broadcast %183 : vector<1x256xf32> to vector<4x256xf32>
    %185 = arith.mulf %91, %184 : vector<4x256xf32>
    %c0_61 = arith.constant 0 : index
    %c0_62 = arith.constant 0 : index
    %c0_63 = arith.constant 0 : index
    %186 = vector.load %arg4[%c0_61, %c0_62, %c0_63] : memref<2x4x256xf32, #tpu.memory_space<vmem>>, vector<1x4x256xf32>
    %187 = vector.shape_cast %186 : vector<1x4x256xf32> to vector<4x256xf32>
    %188 = vector.shape_cast %185 : vector<4x256xf32> to vector<1x4x256xf32>
    tpu.vector_store %arg4[%c0_61, %c0_62, %c0_63], %188 {strides = array<i32>} : memref<2x4x256xf32, #tpu.memory_space<vmem>>, vector<1x4x256xf32>,
    %c1_64 = arith.constant 1 : index
    %c0_65 = arith.constant 0 : index
    %c0_66 = arith.constant 0 : index
    %189 = vector.load %arg3[%c1_64, %c0_65, %c0_66] : memref<2x4x256xf32, #tpu.memory_space<vmem>>, vector<1x4x256xf32>
    %190 = vector.shape_cast %189 : vector<1x4x256xf32> to vector<4x256xf32>
    %cst_67 = arith.constant dense<0xFF800000> : vector<256xf32>
    %191 = vector.multi_reduction <maximumf>, %190, %cst_67 [0] : vector<4x256xf32> to vector<256xf32>
    %192 = vector.shape_cast %191 : vector<256xf32> to vector<1x256xf32>
    %cst_68 = arith.constant dense<0.000000e+00> : vector<256xf32>
    %193 = vector.multi_reduction <add>, %190, %cst_68 [0] : vector<4x256xf32> to vector<256xf32>
    %194 = vector.shape_cast %193 : vector<256xf32> to vector<1x256xf32>
    %cst_69 = arith.constant 2.500000e-01 : f32
    %195 = vector.broadcast %cst_69 : f32 to vector<1x256xf32>
    %196 = arith.mulf %194, %195 : vector<1x256xf32>
    %197 = tpu.concatenate %89, %192, %89 in 1 : vector<1x51xf32>, vector<1x256xf32>, vector<1x51xf32> -> vector<1x358xf32>
    %198 = tpu.concatenate %89, %196, %89 in 1 : vector<1x51xf32>, vector<1x256xf32>, vector<1x51xf32> -> vector<1x358xf32>
    %199 = vector.extract_strided_slice %197 {offsets = [0, 0], sizes = [1, 262], strides = [1, 1]} : vector<1x358xf32> to vector<1x262xf32>
    %200 = vector.extract_strided_slice %197 {offsets = [0, 16], sizes = [1, 262], strides = [1, 1]} : vector<1x358xf32> to vector<1x262xf32>
    %201 = vector.extract_strided_slice %197 {offsets = [0, 32], sizes = [1, 262], strides = [1, 1]} : vector<1x358xf32> to vector<1x262xf32>
    %202 = vector.extract_strided_slice %197 {offsets = [0, 48], sizes = [1, 262], strides = [1, 1]} : vector<1x358xf32> to vector<1x262xf32>
    %203 = vector.extract_strided_slice %197 {offsets = [0, 64], sizes = [1, 262], strides = [1, 1]} : vector<1x358xf32> to vector<1x262xf32>
    %204 = vector.extract_strided_slice %197 {offsets = [0, 80], sizes = [1, 262], strides = [1, 1]} : vector<1x358xf32> to vector<1x262xf32>
    %205 = vector.extract_strided_slice %197 {offsets = [0, 96], sizes = [1, 262], strides = [1, 1]} : vector<1x358xf32> to vector<1x262xf32>
    %206 = vector.extract_strided_slice %198 {offsets = [0, 0], sizes = [1, 262], strides = [1, 1]} : vector<1x358xf32> to vector<1x262xf32>
    %207 = vector.extract_strided_slice %198 {offsets = [0, 16], sizes = [1, 262], strides = [1, 1]} : vector<1x358xf32> to vector<1x262xf32>
    %208 = vector.extract_strided_slice %198 {offsets = [0, 32], sizes = [1, 262], strides = [1, 1]} : vector<1x358xf32> to vector<1x262xf32>
    %209 = vector.extract_strided_slice %198 {offsets = [0, 48], sizes = [1, 262], strides = [1, 1]} : vector<1x358xf32> to vector<1x262xf32>
    %210 = vector.extract_strided_slice %198 {offsets = [0, 64], sizes = [1, 262], strides = [1, 1]} : vector<1x358xf32> to vector<1x262xf32>
    %211 = vector.extract_strided_slice %198 {offsets = [0, 80], sizes = [1, 262], strides = [1, 1]} : vector<1x358xf32> to vector<1x262xf32>
    %212 = vector.extract_strided_slice %198 {offsets = [0, 96], sizes = [1, 262], strides = [1, 1]} : vector<1x358xf32> to vector<1x262xf32>
    %213 = tpu.concatenate %199, %200, %201, %202, %203, %204, %205, %206, %207, %208, %209, %210, %211, %212 in 0 : vector<1x262xf32>, vector<1x262xf32>, vector<1x262xf32>, vector<1x262xf32>, vector<1x262xf32>, vector<1x262xf32>, vector<1x262xf32>, vector<1x262xf32>, vector<1x262xf32>, vector<1x262xf32>, vector<1x262xf32>, vector<1x262xf32>, vector<1x262xf32>, vector<1x262xf32> -> vector<14x262xf32>
    %cst_70 = arith.constant 0.000000e+00 : f32
    %214 = vector.broadcast %cst_70 : f32 to vector<14x256xf32>
    %c0_71 = arith.constant 0 : index
    %c0_72 = arith.constant 0 : index
    %c0_73 = arith.constant 0 : index
    %215 = vector.load %arg1[%c0_71, %c0_72, %c0_73] : memref<7x14x1xf32, #tpu.memory_space<vmem>>, vector<1x14x1xf32>
    %216 = vector.shape_cast %215 : vector<1x14x1xf32> to vector<14x1xf32>
    %217 = vector.extract_strided_slice %213 {offsets = [0, 0], sizes = [14, 256], strides = [1, 1]} : vector<14x262xf32> to vector<14x256xf32>
    %218 = vector.broadcast %216 : vector<14x1xf32> to vector<14x256xf32>
    %219 = arith.mulf %218, %217 : vector<14x256xf32>
    %220 = vector.broadcast %14 : vector<1x256xf32> to vector<14x256xf32>
    %221 = arith.mulf %219, %220 : vector<14x256xf32>
    %222 = arith.addf %214, %221 : vector<14x256xf32>
    %c1_74 = arith.constant 1 : index
    %c0_75 = arith.constant 0 : index
    %c0_76 = arith.constant 0 : index
    %223 = vector.load %arg1[%c1_74, %c0_75, %c0_76] : memref<7x14x1xf32, #tpu.memory_space<vmem>>, vector<1x14x1xf32>
    %224 = vector.shape_cast %223 : vector<1x14x1xf32> to vector<14x1xf32>
    %225 = vector.extract_strided_slice %213 {offsets = [0, 1], sizes = [14, 256], strides = [1, 1]} : vector<14x262xf32> to vector<14x256xf32>
    %226 = vector.broadcast %224 : vector<14x1xf32> to vector<14x256xf32>
    %227 = arith.mulf %226, %225 : vector<14x256xf32>
    %228 = vector.broadcast %26 : vector<1x256xf32> to vector<14x256xf32>
    %229 = arith.mulf %227, %228 : vector<14x256xf32>
    %230 = arith.addf %222, %229 : vector<14x256xf32>
    %c2_77 = arith.constant 2 : index
    %c0_78 = arith.constant 0 : index
    %c0_79 = arith.constant 0 : index
    %231 = vector.load %arg1[%c2_77, %c0_78, %c0_79] : memref<7x14x1xf32, #tpu.memory_space<vmem>>, vector<1x14x1xf32>
    %232 = vector.shape_cast %231 : vector<1x14x1xf32> to vector<14x1xf32>
    %233 = vector.extract_strided_slice %213 {offsets = [0, 2], sizes = [14, 256], strides = [1, 1]} : vector<14x262xf32> to vector<14x256xf32>
    %234 = vector.broadcast %232 : vector<14x1xf32> to vector<14x256xf32>
    %235 = arith.mulf %234, %233 : vector<14x256xf32>
    %236 = vector.broadcast %38 : vector<1x256xf32> to vector<14x256xf32>
    %237 = arith.mulf %235, %236 : vector<14x256xf32>
    %238 = arith.addf %230, %237 : vector<14x256xf32>
    %c3_80 = arith.constant 3 : index
    %c0_81 = arith.constant 0 : index
    %c0_82 = arith.constant 0 : index
    %239 = vector.load %arg1[%c3_80, %c0_81, %c0_82] : memref<7x14x1xf32, #tpu.memory_space<vmem>>, vector<1x14x1xf32>
    %240 = vector.shape_cast %239 : vector<1x14x1xf32> to vector<14x1xf32>
    %241 = vector.extract_strided_slice %213 {offsets = [0, 3], sizes = [14, 256], strides = [1, 1]} : vector<14x262xf32> to vector<14x256xf32>
    %242 = vector.broadcast %240 : vector<14x1xf32> to vector<14x256xf32>
    %243 = arith.mulf %242, %241 : vector<14x256xf32>
    %244 = vector.broadcast %50 : vector<1x256xf32> to vector<14x256xf32>
    %245 = arith.mulf %243, %244 : vector<14x256xf32>
    %246 = arith.addf %238, %245 : vector<14x256xf32>
    %c4_83 = arith.constant 4 : index
    %c0_84 = arith.constant 0 : index
    %c0_85 = arith.constant 0 : index
    %247 = vector.load %arg1[%c4_83, %c0_84, %c0_85] : memref<7x14x1xf32, #tpu.memory_space<vmem>>, vector<1x14x1xf32>
    %248 = vector.shape_cast %247 : vector<1x14x1xf32> to vector<14x1xf32>
    %249 = vector.extract_strided_slice %213 {offsets = [0, 4], sizes = [14, 256], strides = [1, 1]} : vector<14x262xf32> to vector<14x256xf32>
    %250 = vector.broadcast %248 : vector<14x1xf32> to vector<14x256xf32>
    %251 = arith.mulf %250, %249 : vector<14x256xf32>
    %252 = vector.broadcast %62 : vector<1x256xf32> to vector<14x256xf32>
    %253 = arith.mulf %251, %252 : vector<14x256xf32>
    %254 = arith.addf %246, %253 : vector<14x256xf32>
    %c5_86 = arith.constant 5 : index
    %c0_87 = arith.constant 0 : index
    %c0_88 = arith.constant 0 : index
    %255 = vector.load %arg1[%c5_86, %c0_87, %c0_88] : memref<7x14x1xf32, #tpu.memory_space<vmem>>, vector<1x14x1xf32>
    %256 = vector.shape_cast %255 : vector<1x14x1xf32> to vector<14x1xf32>
    %257 = vector.extract_strided_slice %213 {offsets = [0, 5], sizes = [14, 256], strides = [1, 1]} : vector<14x262xf32> to vector<14x256xf32>
    %258 = vector.broadcast %256 : vector<14x1xf32> to vector<14x256xf32>
    %259 = arith.mulf %258, %257 : vector<14x256xf32>
    %260 = vector.broadcast %74 : vector<1x256xf32> to vector<14x256xf32>
    %261 = arith.mulf %259, %260 : vector<14x256xf32>
    %262 = arith.addf %254, %261 : vector<14x256xf32>
    %c6_89 = arith.constant 6 : index
    %c0_90 = arith.constant 0 : index
    %c0_91 = arith.constant 0 : index
    %263 = vector.load %arg1[%c6_89, %c0_90, %c0_91] : memref<7x14x1xf32, #tpu.memory_space<vmem>>, vector<1x14x1xf32>
    %264 = vector.shape_cast %263 : vector<1x14x1xf32> to vector<14x1xf32>
    %265 = vector.extract_strided_slice %213 {offsets = [0, 6], sizes = [14, 256], strides = [1, 1]} : vector<14x262xf32> to vector<14x256xf32>
    %266 = vector.broadcast %264 : vector<14x1xf32> to vector<14x256xf32>
    %267 = arith.mulf %266, %265 : vector<14x256xf32>
    %268 = vector.broadcast %86 : vector<1x256xf32> to vector<14x256xf32>
    %269 = arith.mulf %267, %268 : vector<14x256xf32>
    %270 = arith.addf %262, %269 : vector<14x256xf32>
    %cst_92 = arith.constant dense<0.000000e+00> : vector<256xf32>
    %271 = vector.multi_reduction <add>, %270, %cst_92 [0] : vector<14x256xf32> to vector<256xf32>
    %272 = vector.shape_cast %271 : vector<256xf32> to vector<1x256xf32>
    %273 = vector.broadcast %87 : f32 to vector<1x256xf32>
    %274 = arith.mulf %272, %273 : vector<1x256xf32>
    %275 = vector.broadcast %88 : f32 to vector<1x256xf32>
    %276 = arith.addf %274, %275 : vector<1x256xf32>
    %cst_93 = arith.constant 0.000000e+00 : f32
    %277 = vector.broadcast %cst_93 : f32 to vector<1x256xf32>
    %278 = arith.subf %277, %276 : vector<1x256xf32>
    %279 = math.exp %278 : vector<1x256xf32>
    %cst_94 = arith.constant 1.000000e+00 : f32
    %280 = vector.broadcast %cst_94 : f32 to vector<1x256xf32>
    %281 = arith.addf %280, %279 : vector<1x256xf32>
    %282 = tpu.reciprocal %281 : vector<1x256xf32> -> vector<1x256xf32>
    %283 = vector.broadcast %282 : vector<1x256xf32> to vector<4x256xf32>
    %284 = arith.mulf %190, %283 : vector<4x256xf32>
    %c1_95 = arith.constant 1 : index
    %c0_96 = arith.constant 0 : index
    %c0_97 = arith.constant 0 : index
    %285 = vector.load %arg4[%c1_95, %c0_96, %c0_97] : memref<2x4x256xf32, #tpu.memory_space<vmem>>, vector<1x4x256xf32>
    %286 = vector.shape_cast %285 : vector<1x4x256xf32> to vector<4x256xf32>
    %287 = vector.shape_cast %284 : vector<4x256xf32> to vector<1x4x256xf32>
    tpu.vector_store %arg4[%c1_95, %c0_96, %c0_97], %287 {strides = array<i32>} : memref<2x4x256xf32, #tpu.memory_space<vmem>>, vector<1x4x256xf32>,
    return
  }
  func.func @transform_0(%arg0: i32) -> (i32, i32, i32) {
    %c0_i32 = arith.constant 0 : i32
    %c0_i32_0 = arith.constant 0 : i32
    %c0_i32_1 = arith.constant 0 : i32
    %c0_i32_2 = arith.constant 0 : i32
    return %c0_i32, %c0_i32_0, %c0_i32_1 : i32, i32, i32
  }
  func.func @transform_1(%arg0: i32) -> i32 {
    %c0_i32 = arith.constant 0 : i32
    %c0_i32_0 = arith.constant 0 : i32
    return %c0_i32 : i32
  }
  func.func @transform_2(%arg0: i32) -> (i32, i32, i32) {
    %c0_i32 = arith.constant 0 : i32
    %c0_i32_0 = arith.constant 0 : i32
    %c0_i32_1 = arith.constant 0 : i32
    return %arg0, %c0_i32, %c0_i32_0 : i32, i32, i32
  }
  func.func @transform_3(%arg0: i32) -> (i32, i32, i32) {
    %c0_i32 = arith.constant 0 : i32
    %c0_i32_0 = arith.constant 0 : i32
    %c0_i32_1 = arith.constant 0 : i32
    return %arg0, %c0_i32, %c0_i32_0 : i32, i32, i32
  }
}

</mosaic_0001>

<bundles_post_ra>
// kernel: tpu_custom_call.1
= control target key start
LH: loop header
LB: loop body
LE: loop exit
PB: predicated region body
PF: predicated region fallthrough
CT: control target
= control target key end

     0   :  { %8 = vsyncpa [#allocation5], 0  ;;  %s2963_s0 = inlined_call_operand.vmem [shape: f32[7,14,1], index: 0, kind: input, shape index: {}]   ;;  %s2964_s1 = inlined_call_operand.vmem [shape: f32[2], index: 1, kind: input, shape index: {}]   ;;  %s2965_s2 = inlined_call_operand.hbm [shape: f32[2,4,256], index: 2, kind: input, shape index: {}, may-alias: {2,3}]   ;;  %s2966_s3 = inlined_call_operand.hbm [shape: f32[2,4,256], index: 3, kind: output, shape index: {}, may-alias: {2,3}]  }
   0x1   :  { %9 = vsyncpa [#allocation3], 0 }
   0x2   :  { %10 = vsyncpa [#allocation4], 0  ;;  %s19_s14 = sshll.u32 %s2964_s1, 4  ;;  %s20_s14 = int_to_ptr.vmem [resolvable:$true] %s19_s14 }
   0x3   :  { %s1651_s15 = scalar_lea.vmem %s20_s14, 16  ;;  %p1656_p1 = scmp.lt.s32.totalorder %s20_s14, %s20_s14 }
   0x4   :  { %p1652_p0 = scmp.ne.s32.totalorder %s20_s14, %s1651_s15  ;;  %p1657_p2 = scmp.lt.s32.totalorder %s1651_s15, %s1651_s15 }
   0x6   :  { %p1658_p3 = por %p1657_p2, %p1656_p1 }
   0x8   :  { %p1659_p4 = pnand %p1658_p3, %p1652_p0 }
   0xa   :  { %1662 = shalt.err (!%p1659_p4)
}
   0xb   :  { %s1709_s16 = smov [#allocation2]   ;;  %s1710_s17 = smov [#allocation6]  }
   0xc   :  { %22 = dma.vmem_to_smem %s20_s14, 16, %s1709_s16, [#allocation5]  }
   0xd   :  { %s28_s18 = sshll.u32 %s1710_s17, 4  ;;  %s29_s18 = int_to_ptr.vmem [resolvable:$true] %s28_s18 }
   0xe   :  { %s1671_s19 = scalar_lea.vmem %s29_s18, 256  ;;  %p1676_p6 = scmp.lt.s32.totalorder %s29_s18, %s29_s18 }
   0xf   :  { %p1672_p5 = scmp.ne.s32.totalorder %s29_s18, %s1671_s19  ;;  %p1677_p7 = scmp.lt.s32.totalorder %s1671_s19, %s1671_s19 }
  0x11   :  { %p1678_p8 = por %p1677_p7, %p1676_p6 }
  0x13   :  { %p1679_p9 = pnand %p1678_p8, %p1672_p5 }
  0x15   :  { %1682 = shalt.err (!%p1679_p9)
}
  0x16   :  { %s1711_s1 = smov 128   ;;  %s1712_s20 = smov 8  }
  0x17   :  { %34 = dma.hbm_to_vmem [thread:$0]  %s2965_s2, 256, %s29_s18, [#allocation3], %s1711_s1, %s1711_s1, %s1712_s20  }
  0x18   :  { %1703 = dma.done.wait [#allocation5], 16  }
  0x19   :  { %1704 = vsyncadd [#allocation5], 4294967280 }
  0x1a   :  { %1705 = dma.done.wait [#allocation3], 256  }
  0x1b   :  { %1706 = vsyncadd [#allocation3], 4294967040 }
  0x1c   :  { %41 = sfence }
  0x1d   :  { %v411_v0 = vld [vmem:[%s2963_s0] sm:$0xff]  ;;  %v412_v1 = vld [vmem:[%s2963_s0 + $0x8] sm:$0x3f]  ;;  %v42_v2 = vlaneseq  ;;  %v1713_v3 = vmov 0   ;;  %vm133_vm0 = vcmask 1043456   ;;  %v1779_v10 = vld [vmem:[%s2963_s0 + $0x10] sm:$0xff] }
  0x1e   :  { %1599 = vset.pattern.permute.xlu0 %v1713_v3  ;;  %1600 = vset.pattern.permute.xlu1 %v1713_v3  ;;  %v129_v4 = vld [vmem:[#allocation6] sm:$0xff]  ;;  %v1549_v9 = vld [vmem:[%s2963_s0 + $0x18] sm:$0x3f]  ;;  %v2967_v29 = vmov 0.0   ;;  %v876_v41 = vld [vmem:[#allocation6 + $0x8] sm:$0xff]  ;;  %s1715_s30 = smov 1  }
  0x1f   :  { %415 = vperm.xlu0 %1599, %v411_v0   ;;  %420 = vperm.xlu1 %1600, %v412_v1   ;;  %v134_v5 = vsel %vm133_vm0, %v129_v4, -inf  ;;  %v43_v6 = vand.u32 127, %v42_v2  ;;  %v131_v7 = vcombine.high %v129_v4, %v129_v4  ;;  %v148_v8 = vsel %vm133_vm0, %v129_v4, 0.0  ;;  %s1716_s4 = smov 51   ;;  %v1550_v59 = vld [vmem:[%s2963_s0 + $0x20] sm:$0xff]  ;;  %s1717_s9 = smov 2  }
  0x20   :  { %v135_v11 = vrot.slane %v134_v5, 4  ;;  %v149_v12 = vrot.slane %v148_v8, 4  ;;  %v878_v49 = vcombine.high %v876_v41, %v876_v41  ;;  %v880_v51 = vsel %vm133_vm0, %v876_v41, -inf  ;;  %v1551_v2 = vld [vmem:[%s2963_s0 + $0x28] sm:$0x3f]  ;;  %s1719_s16 = smov 3  }
  0x21   :  { %v44_v13 = vadd.s32 128, %v43_v6  ;;  %v1781_v14 = vand.u32 15, %v43_v6  ;;  %v141_v15 = vsel %vm133_vm0, %v131_v7, -inf  ;;  %v155_v16 = vsel %vm133_vm0, %v131_v7, 0.0  ;;  %s1720_s19 = smov 4   ;;  %s1721_s2 = smov 5  }
  0x22   :  { %v136_v17 = vmax.f32 %v134_v5, %v135_v11  ;;  %v142_v18 = vrot.slane %v141_v15, 4  ;;  %v150_v19 = vadd.f32 %v149_v12, %v148_v8  ;;  %v156_v20 = vrot.slane %v155_v16, 4  ;;  %s1722_s29 = smov 6   ;;  %s1725_s5 = smov 80  }
  0x23   :  { %3049 = vst [vmem:[#allocation11_spill] sm:$0xff] %v1781_v14  ;;  %445 = vperm.xlu0 %1599, %v1549_v9   ;;  %440 = vperm.xlu1 %1600, %v1779_v10   ;;  %v1786_v21 = vand.u32 15, %v44_v13  ;;  %v69_v22 = vadd.s32 4294967294, %v1781_v14  ;;  %v79_v40 = vadd.s32 4294967295, %v1781_v14  ;;  %v894_v52 = vsel %vm133_vm0, %v876_v41, 0.0  ;;  %v1552_v9 = vld [vmem:[%s2963_s0 + $0x30] sm:$0xff] }
  0x24   :  { %v137_v23 = vrot.slane %v136_v17, 2  ;;  %v143_v24 = vmax.f32 %v141_v15, %v142_v18  ;;  %v151_v25 = vrot.slane %v150_v19, 2  ;;  %v157_v26 = vadd.f32 %v156_v20, %v155_v16  ;;  %v1553_v13 = vld [vmem:[%s2963_s0 + $0x38] sm:$0x3f]  ;;  %v1556_v41 = vld [vmem:[%s2963_s0 + $0x50] sm:$0xff]  ;;  %s1726_s6 = smov 64  }
  0x25   :  { %3050 = vst [vmem:[#allocation12_spill] sm:$0xff] %v1786_v21  ;;  %v70_v27 = vadd.s32 4294967294, %v1786_v21  ;;  %vm71_vm1 = vcmp.ge.s32.totalorder %v69_v22, 0  ;;  %v80_v45 = vadd.s32 4294967295, %v1786_v21  ;;  %vm81_vm3 = vcmp.ge.s32.totalorder %v79_v40, 0  ;;  %s1727_s7 = smov 48  }
  0x26   :  { %v138_v28 = vmax.f32 %v136_v17, %v137_v23  ;;  %v77_v30 = vsel %vm71_vm1, 1.0, %v2967_v29  ;;  %v144_v31 = vrot.slane %v143_v24, 2  ;;  %v152_v32 = vadd.f32 %v151_v25, %v150_v19  ;;  %v1554_v19 = vld [vmem:[%s2963_s0 + $0x40] sm:$0xff]  ;;  %s1728_s8 = smov 32   ;;  %s1729_s11 = smov 127  }
  0x27   :  { %vm72_vm2 = vcmp.ge.s32.totalorder %v70_v27, 0  ;;  %v158_v33 = vrot.slane %v157_v26, 2  ;;  %vm82_vm4 = vcmp.ge.s32.totalorder %v80_v45, 0  ;;  %v887_v53 = vsel %vm133_vm0, %v878_v49, -inf  ;;  %v1555_v27 = vld [vmem:[%s2963_s0 + $0x48] sm:$0x3f] }
  0x28   :  { %v139_v34 = vrot.slane %v138_v28, 1  ;;  %v78_v35 = vsel %vm72_vm2, 1.0, %v2967_v29  ;;  %v145_v36 = vmax.f32 %v143_v24, %v144_v31  ;;  %v153_v37 = vrot.slane %v152_v32, 1  ;;  %s1730_s12 = smov 126   ;;  %s1731_s13 = smov 125  }
  0x29   :  { %v1601_v38 = vpack.i.bf16 %v78_v35, %v77_v30  ;;  %v159_v39 = vadd.f32 %v158_v33, %v157_v26  ;;  %v888_v55 = vrot.slane %v887_v53, 4  ;;  %v881_v56 = vrot.slane %v880_v51, 4  ;;  %s1732_s14 = smov 124   ;;  %s1733_s15 = smov 123  }
  0x2a   :  { %v140_v42 = vmax.f32 %v138_v28, %v139_v34  ;;  %v146_v43 = vrot.slane %v145_v36, 1  ;;  %v154_v44 = vadd.f32 %v153_v37, %v152_v32  ;;  %v895_v57 = vrot.slane %v894_v52, 4  ;;  %s2680_s21 = sld [smem:[#allocation2 + $0x1]] }
  0x2b   :  { %1602 = vrot.lane.b32.xlu1 %v1601_v38, %s1715_s30  ;;  %v160_v46 = vrot.slane %v159_v39, 1  ;;  %v901_v58 = vsel %vm133_vm0, %v878_v49, 0.0  ;;  %v87_v60 = vsel %vm81_vm3, 1.0, %v2967_v29  ;;  %v88_v61 = vsel %vm82_vm4, 1.0, %v2967_v29  ;;  %v1559_v49 = vld [vmem:[%s2963_s0 + $0x68] sm:$0x3f] }
  0x2c   :  { %166 = vrot.lane.b32.xlu0 %v140_v42, %s1716_s4  ;;  %v147_v47 = vmax.f32 %v145_v36, %v146_v43  ;;  %v162_v48 = vmul.f32 0.25, %v154_v44  ;;  %v902_v62 = vrot.slane %v901_v58, 4  ;;  %v889_v63 = vmax.f32 %v887_v53, %v888_v55  ;;  %v1557_v44 = vld [vmem:[%s2963_s0 + $0x58] sm:$0x3f]  ;;  %s1723_s30 = smov 112  }
  0x2d   :  { %v161_v50 = vadd.f32 %v160_v46, %v159_v39  ;;  %v1606_v1 = vpack.i.bf16 %v88_v61, %v87_v60  ;;  %v882_v3 = vmax.f32 %v880_v51, %v881_v56  ;;  %v896_v4 = vadd.f32 %v895_v57, %v894_v52  ;;  %v1558_v46 = vld [vmem:[%s2963_s0 + $0x60] sm:$0xff] }
  0x2e   :  { %v903_v0 = vadd.f32 %v902_v62, %v901_v58  ;;  %v97_v5 = vadd.s32 1, %v1781_v14  ;;  %v98_v6 = vadd.s32 1, %v1786_v21  ;;  %v890_v7 = vrot.slane %v889_v63, 2 }
  0x2f   :  { %179 = vrot.lane.b32.xlu1 %v162_v48, %s1716_s4  ;;  %v163_v54 = vmul.f32 0.25, %v161_v50  ;;  %v883_v11 = vrot.slane %v882_v3, 2  ;;  %v897_v12 = vrot.slane %v896_v4, 2  ;;  %v1718_v23 = vmov 1.0|1.0  }
  0x30   :  { %168 = vrot.lane.b32.xlu0 %v147_v47, %s1716_s4  ;;  %v904_v8 = vrot.slane %v903_v0, 2  ;;  %vm101_vm5 = vcmp.lt.s32.totalorder %v97_v5, 16  ;;  %vm102_vm6 = vcmp.lt.s32.totalorder %v98_v6, 16  ;;  %v891_v15 = vmax.f32 %v889_v63, %v890_v7 }
  0x31   :  { %v884_v17 = vmax.f32 %v882_v3, %v883_v11  ;;  %v898_v18 = vadd.f32 %v897_v12, %v896_v4  ;;  %v105_v20 = vsel %vm101_vm5, 1.0, %v2967_v29  ;;  %v106_v22 = vsel %vm102_vm6, 1.0, %v2967_v29 }
  0x32   :  { %v905_v16 = vadd.f32 %v904_v8, %v903_v0  ;;  %v892_v24 = vrot.slane %v891_v15, 1  ;;  %v1616_v26 = vpack.i.bf16 %v106_v22, %v105_v20  ;;  %v107_v35 = vadd.s32 2, %v1781_v14 }
  0x33   :  { %181 = vrot.lane.b32.xlu1 %v163_v54, %s1716_s4  ;;  %v885_v28 = vrot.slane %v884_v17, 1  ;;  %v899_v30 = vrot.slane %v898_v18, 1  ;;  %v108_v36 = vadd.s32 2, %v1786_v21  ;;  %v117_v39 = vadd.s32 3, %v1781_v14 }
  0x34   :  { %507 = vperm.xlu0 %1599, %v1550_v59   ;;  %v906_v25 = vrot.slane %v905_v16, 1  ;;  %v893_v31 = vmax.f32 %v891_v15, %v892_v24  ;;  %vm111_vm7 = vcmp.lt.s32.totalorder %v107_v35, 16  ;;  %v118_v40 = vadd.s32 3, %v1786_v21 }
  0x35   :  { %v886_v33 = vmax.f32 %v884_v17, %v885_v28  ;;  %v900_v34 = vadd.f32 %v899_v30, %v898_v18  ;;  %vm112_vm8 = vcmp.lt.s32.totalorder %v108_v36, 16  ;;  %v115_v42 = vsel %vm111_vm7, 1.0, %v2967_v29 }
  0x36   :  { %v907_v32 = vadd.f32 %v906_v25, %v905_v16  ;;  %v116_v43 = vsel %vm112_vm8, 1.0, %v2967_v29  ;;  %vm121_vm9 = vcmp.lt.s32.totalorder %v117_v39, 16  ;;  %vm122_vm10 = vcmp.lt.s32.totalorder %v118_v40, 16 }
  0x37   :  { %512 = vperm.xlu1 %1600, %v1551_v2   ;;  %v908_v38 = vmul.f32 0.25, %v900_v34  ;;  %v1621_v45 = vpack.i.bf16 %v116_v43, %v115_v42  ;;  %v125_v47 = vsel %vm121_vm9, 1.0, %v2967_v29  ;;  %v126_v48 = vsel %vm122_vm10, 1.0, %v2967_v29 }
  0x38   :  { %1607 = vrot.lane.b32.xlu0 %v1606_v1, %s1717_s9  ;;  %v909_v37 = vmul.f32 0.25, %v907_v32  ;;  %v1626_v50 = vpack.i.bf16 %v126_v48, %v125_v47  ;;  %vm170_vm11 = vcmask 416768   ;;  %vm369_vm12 = vcmask 1040384  }
  0x39   :  { %vm373_vm13 = vcmask 1041408   ;;  %vm377_vm14 = vcmask 1042432   ;;  %vm3043_vm15 = vcmask 1044480   ;;  %vm388_vm1 = vcmask 1045504  }
  0x3a   :  { %vm3041_vm2 = vcmask 1046528   ;;  %vm199_vm3 = vcmask 916480   ;;  %vm214_vm4 = vcmask 785408   ;;  %vm229_vm5 = vcmask 654336  }
  0x3b   :  { %574 = vperm.xlu1 %1600, %v1552_v9   ;;  %vm244_vm6 = vcmask 523264   ;;  %vm259_vm7 = vcmask 392192   ;;  %vm3044_vm8 = vcmask 261120   ;;  %vm460_vm9 = vcmask 7168  }
  0x3c   :  { %579 = vperm.xlu0 %1599, %v1553_v13   ;;  %vm527_vm10 = vcmask 15360  }
  0x3f   :  { %1612 = vrot.lane.b32.xlu1 %v1718_v23, %s1719_s16  ;;  %s1734_s16 = smov 122  }
  0x40   :  { %641 = vperm.xlu0 %1599, %v1554_v19  }
  0x43   :  { %646 = vperm.xlu1 %1600, %v1555_v27  }
  0x44   :  { %1617 = vrot.lane.b32.xlu0 %v1616_v26, %s1720_s19 }
  0x47   :  { %914 = vrot.lane.b32.xlu1 %v893_v31, %s1716_s4 }
  0x48   :  { %912 = vrot.lane.b32.xlu0 %v886_v33, %s1716_s4 }
  0x4b   :  { %926 = vrot.lane.b32.xlu1 %v909_v37, %s1716_s4 }
  0x4c   :  { %924 = vrot.lane.b32.xlu0 %v908_v38, %s1716_s4  ;;  %s1724_s4 = smov 96  }
  0x4f   :  { %708 = vperm.xlu1 %1600, %v1556_v41  }
  0x50   :  { %713 = vperm.xlu0 %1599, %v1557_v44  }
  0x53   :  { %1622 = vrot.lane.b32.xlu1 %v1621_v45, %s1721_s2 }
  0x54   :  { %775 = vperm.xlu0 %1599, %v1558_v46  }
  0x57   :  { %780 = vperm.xlu1 %1600, %v1559_v49  }
  0x58   :  { %1627 = vrot.lane.b32.xlu0 %v1626_v50, %s1722_s29 }
  0x9a   :  { %v1850_v51 = vpop.permute.xlu0 %415  ;;  %v1852_v52 = vpop.permute.xlu1 %420 }
  0x9b   :  { %3051 = vst [vmem:[#allocation13_spill] sm:$0xff] %v1850_v51  ;;  %3052 = vst [vmem:[#allocation14_spill] sm:$0xff] %v1852_v52 }
  0x9e   :  { %v1854_v53 = vpop.permute.xlu0 %445  ;;  %v1856_v54 = vpop.permute.xlu1 %440 }
  0x9f   :  { %3053 = vst [vmem:[#allocation15_spill] sm:$0xff] %v1854_v53  ;;  %3054 = vst [vmem:[#allocation16_spill] sm:$0xff] %v1856_v54 }
  0xa2   :  { %v167_v55 = vpop.permute.xlu0 %166  ;;  %v1865_v59 = vpop.permute.xlu1 %1602 }
  0xa3   :  { %v1859_v56 = vsel %vm170_vm11, 0.0, %v167_v55  ;;  %3055 = vst [vmem:[#allocation17_spill] sm:$0xff] %v1865_v59 }
  0xa4   :  { %v190_v57 = vrot.slane %v1859_v56, 7  ;;  %v205_v58 = vrot.slane %v1859_v56, 6  ;;  %v220_v60 = vrot.slane %v1859_v56, 5  ;;  %v235_v61 = vrot.slane %v1859_v56, 4 }
  0xa5   :  { %v250_v63 = vrot.slane %v1859_v56, 3  ;;  %v265_v0 = vrot.slane %v1859_v56, 2 }
  0xa6   :  { %193 = vrot.lane.b32.xlu0 %v190_v57, %s1723_s30  ;;  %208 = vrot.lane.b32.xlu1 %v205_v58, %s1724_s4  ;;  %v169_v62 = vpop.permute.xlu0 %168  ;;  %v180_v1 = vpop.permute.xlu1 %179 }
  0xa7   :  { %v1876_v2 = vsel %vm170_vm11, 0.0, %v180_v1  ;;  %v1896_v13 = vsel %vm170_vm11, %v167_v55, %v169_v62  ;;  %v1899_v15 = vsel %vm170_vm11, %v169_v62, 0.0 }
  0xa8   :  { %v191_v17 = vrot.slane %v1896_v13, 7  ;;  %v192_v18 = vrot.slane %v1899_v15, 7  ;;  %v207_v19 = vrot.slane %v1899_v15, 6  ;;  %v206_v20 = vrot.slane %v1896_v13, 6 }
  0xa9   :  { %v221_v23 = vrot.slane %v1896_v13, 5  ;;  %v222_v24 = vrot.slane %v1899_v15, 5  ;;  %v237_v26 = vrot.slane %v1899_v15, 4  ;;  %v236_v27 = vrot.slane %v1896_v13, 4 }
  0xaa   :  { %223 = vrot.lane.b32.xlu0 %v220_v60, %s1725_s5  ;;  %238 = vrot.lane.b32.xlu1 %v235_v61, %s1726_s6  ;;  %v182_v16 = vpop.permute.xlu1 %181  ;;  %v251_v28 = vrot.slane %v1896_v13, 3  ;;  %v252_v30 = vrot.slane %v1899_v15, 3  ;;  %v267_v32 = vrot.slane %v1899_v15, 2  ;;  %v266_v33 = vrot.slane %v1896_v13, 2 }
  0xab   :  { %v1936_v35 = vsel %vm170_vm11, %v180_v1, %v182_v16  ;;  %v1939_v36 = vsel %vm170_vm11, %v182_v16, 0.0  ;;  %v313_v37 = vrot.slane %v1876_v2, 6  ;;  %v299_v38 = vrot.slane %v1876_v2, 7 }
  0xac   :  { %v341_v40 = vrot.slane %v1876_v2, 4  ;;  %v327_v41 = vrot.slane %v1876_v2, 5  ;;  %v355_v44 = vrot.slane %v1876_v2, 3  ;;  %v300_v47 = vrot.slane %v1936_v35, 7 }
  0xad   :  { %v315_v49 = vrot.slane %v1939_v36, 6  ;;  %v301_v50 = vrot.slane %v1939_v36, 7  ;;  %v328_v55 = vrot.slane %v1936_v35, 5  ;;  %v314_v57 = vrot.slane %v1936_v35, 6 }
  0xae   :  { %253 = vrot.lane.b32.xlu0 %v250_v63, %s1727_s7  ;;  %268 = vrot.lane.b32.xlu1 %v265_v0, %s1728_s8  ;;  %v343_v58 = vrot.slane %v1939_v36, 4  ;;  %v329_v60 = vrot.slane %v1939_v36, 5  ;;  %v356_v61 = vrot.slane %v1936_v35, 3  ;;  %v342_v62 = vrot.slane %v1936_v35, 4 }
  0xaf   :  { %v1878_v3 = vpop.permute.xlu0 %507 }
  0xb2   :  { %288 = vrot.lane.b32.xlu0 %v1876_v2, %s1723_s30  ;;  %v1909_v22 = vpop.permute.xlu1 %512 }
  0xb3   :  { %v1882_v4 = vpop.permute.xlu0 %1607  ;;  %3058 = vst [vmem:[#allocation20_spill] sm:$0xff] %v1909_v22 }
  0xb4   :  { %3056 = vst [vmem:[#allocation18_spill] sm:$0xff] %v1882_v4 }
  0xb6   :  { %v1917_v25 = vpop.permute.xlu1 %574 }
  0xb7   :  { %v1884_v5 = vpop.permute.xlu0 %579 }
  0xba   :  { %v1925_v31 = vpop.permute.xlu1 %1612 }
  0xbb   :  { %v1886_v6 = vpop.permute.xlu0 %641 }
  0xbe   :  { %v1933_v34 = vpop.permute.xlu1 %646 }
  0xbf   :  { %v1888_v7 = vpop.permute.xlu0 %1617 }
  0xc2   :  { %v915_v39 = vpop.permute.xlu1 %914 }
  0xc3   :  { %v913_v8 = vpop.permute.xlu0 %912  ;;  %v1957_v43 = vsel %vm170_vm11, %v915_v39, 0.0 }
  0xc4   :  { %v1891_v9 = vsel %vm170_vm11, 0.0, %v913_v8  ;;  %v1952_v42 = vsel %vm170_vm11, %v913_v8, %v915_v39  ;;  %3060 = vst [vmem:[#allocation22_spill] sm:$0xff] %v1957_v43  ;;  %v937_v46 = vrot.slane %v1957_v43, 7  ;;  %v951_v63 = vrot.slane %v1957_v43, 6 }
  0xc5   :  { %3057 = vst [vmem:[#allocation19_spill] sm:$0xff] %v1891_v9  ;;  %v935_v11 = vrot.slane %v1891_v9, 7  ;;  %v949_v12 = vrot.slane %v1891_v9, 6  ;;  %3059 = vst [vmem:[#allocation21_spill] sm:$0xff] %v1952_v42  ;;  %v936_v45 = vrot.slane %v1952_v42, 7  ;;  %v950_v48 = vrot.slane %v1952_v42, 6 }
  0xc6   :  { %v927_v1 = vpop.permute.xlu1 %926 }
  0xc7   :  { %938 = vrot.lane.b32.xlu1 %v935_v11, %s1723_s30  ;;  %952 = vrot.lane.b32.xlu0 %v949_v12, %s1724_s4  ;;  %v925_v0 = vpop.permute.xlu0 %924  ;;  %v357_v12 = vrot.slane %v1939_v36, 3 }
  0xc8   :  { %v1988_v8 = vsel %vm170_vm11, 0.0, %v925_v0  ;;  %v1991_v11 = vsel %vm170_vm11, %v925_v0, %v927_v1  ;;  %v991_v0 = vrot.slane %v1891_v9, 3 }
  0xc9   :  { %3061 = vst [vmem:[#allocation23_spill] sm:$0xff] %v1988_v8  ;;  %3062 = vst [vmem:[#allocation24_spill] sm:$0xff] %v1991_v11  ;;  %v1038_v16 = vrot.slane %v1988_v8, 7  ;;  %v1053_v39 = vrot.slane %v1991_v11, 6 }
  0xcb   :  { %195 = vrot.lane.b32.xlu1 %v191_v17, %s1723_s30  ;;  %197 = vrot.lane.b32.xlu0 %v192_v18, %s1723_s30  ;;  %v1999_v17 = vsel %vm170_vm11, %v927_v1, 0.0  ;;  %vm594_vm11 = vcmask 23552  }
  0xcc   :  { %3063 = vst [vmem:[#allocation25_spill] sm:$0xff] %v1999_v17  ;;  %v1040_v18 = vrot.slane %v1999_v17, 7 }
  0xcf   :  { %212 = vrot.lane.b32.xlu1 %v207_v19, %s1724_s4  ;;  %210 = vrot.lane.b32.xlu0 %v206_v20, %s1724_s4  ;;  %v2005_v19 = vpop.permute.xlu0 %713  ;;  %v1039_v20 = vrot.slane %v1991_v11, 7 }
  0xd3   :  { %225 = vrot.lane.b32.xlu1 %v221_v23, %s1725_s5  ;;  %227 = vrot.lane.b32.xlu0 %v222_v24, %s1725_s5  ;;  %v964_v23 = vrot.slane %v1952_v42, 5  ;;  %v1052_v24 = vrot.slane %v1988_v8, 6 }
  0xd7   :  { %242 = vrot.lane.b32.xlu1 %v237_v26, %s1726_s6  ;;  %240 = vrot.lane.b32.xlu0 %v236_v27, %s1726_s6  ;;  %v2015_v26 = vpop.permute.xlu1 %708  ;;  %v2017_v27 = vpop.permute.xlu0 %775 }
  0xd8   :  { %3064 = vst [vmem:[#allocation26_spill] sm:$0xff] %v2017_v27  ;;  %v2216_v27 = vunpack.i.h.bf16 %v1925_v31 }
  0xda   :  { %3077 = vst [vmem:[#allocation39_spill] sm:$0xff] %v2216_v27 }
  0xdb   :  { %255 = vrot.lane.b32.xlu1 %v251_v28, %s1727_s7  ;;  %257 = vrot.lane.b32.xlu0 %v252_v30, %s1727_s7  ;;  %v963_v28 = vrot.slane %v1891_v9, 5  ;;  %v2022_v30 = vpop.permute.xlu0 %1627 }
  0xdf   :  { %272 = vrot.lane.b32.xlu1 %v267_v32, %s1728_s8  ;;  %270 = vrot.lane.b32.xlu0 %v266_v33, %s1728_s8  ;;  %v1054_v32 = vrot.slane %v1999_v17, 6  ;;  %v965_v33 = vrot.slane %v1957_v43, 5 }
  0xe3   :  { %292 = vrot.lane.b32.xlu0 %v1939_v36, %s1723_s30  ;;  %290 = vrot.lane.b32.xlu1 %v1936_v35, %s1723_s30 }
  0xe7   :  { %316 = vrot.lane.b32.xlu0 %v313_v37, %s1725_s5  ;;  %302 = vrot.lane.b32.xlu1 %v299_v38, %s1724_s4  ;;  %v2026_v37 = vpop.permute.xlu1 %1622  ;;  %v977_v38 = vrot.slane %v1891_v9, 4 }
  0xeb   :  { %344 = vrot.lane.b32.xlu0 %v341_v40, %s1727_s7  ;;  %330 = vrot.lane.b32.xlu1 %v327_v41, %s1726_s6  ;;  %v1561_v41 = vld [vmem:[%s2963_s0 + $0x18] sm:$0x3f] }
  0xef   :  { %358 = vrot.lane.b32.xlu1 %v355_v44, %s1728_s8  ;;  %940 = vrot.lane.b32.xlu0 %v936_v45, %s1723_s30  ;;  %v2039_v44 = vpop.permute.xlu1 %780  ;;  %v979_v45 = vrot.slane %v1957_v43, 4 }
  0xf3   :  { %942 = vrot.lane.b32.xlu1 %v937_v46, %s1723_s30  ;;  %304 = vrot.lane.b32.xlu0 %v300_v47, %s1724_s4 }
  0xf7   :  { %954 = vrot.lane.b32.xlu1 %v950_v48, %s1724_s4  ;;  %320 = vrot.lane.b32.xlu0 %v315_v49, %s1725_s5  ;;  %v1067_v48 = vrot.slane %v1991_v11, 5  ;;  %v978_v49 = vrot.slane %v1952_v42, 4 }
  0xfb   :  { %306 = vrot.lane.b32.xlu1 %v301_v50, %s1724_s4  ;;  %332 = vrot.lane.b32.xlu0 %v328_v55, %s1726_s6  ;;  %v1066_v50 = vrot.slane %v1988_v8, 5 }
  0xff   :  { %318 = vrot.lane.b32.xlu1 %v314_v57, %s1725_s5  ;;  %348 = vrot.lane.b32.xlu0 %v343_v58, %s1727_s7  ;;  %v992_v58 = vrot.slane %v1952_v42, 3 }
 0x103   :  { %334 = vrot.lane.b32.xlu1 %v329_v60, %s1726_s6  ;;  %360 = vrot.lane.b32.xlu0 %v356_v61, %s1728_s8  ;;  %v1068_v60 = vrot.slane %v1999_v17, 5 }
 0x107   :  { %346 = vrot.lane.b32.xlu1 %v342_v62, %s1727_s7  ;;  %956 = vrot.lane.b32.xlu0 %v951_v63, %s1724_s4  ;;  %v1080_v63 = vrot.slane %v1988_v8, 4 }
 0x10b   :  { %362 = vrot.lane.b32.xlu1 %v357_v12, %s1728_s8  ;;  %1029 = vrot.lane.b32.xlu0 %v1991_v11, %s1723_s30  ;;  %v993_v12 = vrot.slane %v1957_v43, 3 }
 0x10f   :  { %1027 = vrot.lane.b32.xlu1 %v1988_v8, %s1723_s30  ;;  %1041 = vrot.lane.b32.xlu0 %v1038_v16, %s1724_s4 }
 0x113   :  { %1031 = vrot.lane.b32.xlu1 %v1999_v17, %s1723_s30  ;;  %1045 = vrot.lane.b32.xlu0 %v1040_v18, %s1724_s4 }
 0x117   :  { %968 = vrot.lane.b32.xlu0 %v964_v23, %s1725_s5  ;;  %1043 = vrot.lane.b32.xlu1 %v1039_v20, %s1724_s4  ;;  %v1081_v20 = vrot.slane %v1991_v11, 4 }
 0x118   :  { %v2032_v40 = vpop.permute.xlu0 %193  ;;  %v2043_v46 = vpop.permute.xlu1 %208 }
 0x11b   :  { %1055 = vrot.lane.b32.xlu0 %v1052_v24, %s1725_s5  ;;  %966 = vrot.lane.b32.xlu1 %v963_v28, %s1725_s5 }
 0x11c   :  { %v2045_v47 = vpop.permute.xlu0 %223  ;;  %v2052_v55 = vpop.permute.xlu1 %238 }
 0x11f   :  { %1059 = vrot.lane.b32.xlu0 %v1054_v32, %s1725_s5  ;;  %970 = vrot.lane.b32.xlu1 %v965_v33, %s1725_s5 }
 0x120   :  { %v2054_v57 = vpop.permute.xlu0 %253  ;;  %v2064_v62 = vpop.permute.xlu1 %268 }
 0x123   :  { %980 = vrot.lane.b32.xlu0 %v977_v38, %s1726_s6  ;;  %1057 = vrot.lane.b32.xlu1 %v1053_v39, %s1725_s5 }
 0x124   :  { %v2062_v61 = vpop.permute.xlu0 %288 }
 0x127   :  { %984 = vrot.lane.b32.xlu0 %v979_v45, %s1726_s6  ;;  %1177 = vperm.xlu1 %1600, %v1561_v41  }
 0x12b   :  { %1071 = vrot.lane.b32.xlu0 %v1067_v48, %s1726_s6  ;;  %982 = vrot.lane.b32.xlu1 %v978_v49, %s1726_s6 }
 0x12f   :  { %1172 = vperm.xlu0 %1599, %v1779_v10   ;;  %1069 = vrot.lane.b32.xlu1 %v1066_v50, %s1726_s6 }
 0x133   :  { %996 = vrot.lane.b32.xlu0 %v992_v58, %s1727_s7  ;;  %1073 = vrot.lane.b32.xlu1 %v1068_v60, %s1726_s6  ;;  %v284_v60 = vrot.slane %v1939_v36, 1 }
 0x137   :  { %1083 = vrot.lane.b32.xlu0 %v1080_v63, %s1727_s7  ;;  %994 = vrot.lane.b32.xlu1 %v991_v0, %s1727_s7 }
 0x139   :  { %v2070_v10 = vpop.permute.xlu0 %952  ;;  %v2072_v1 = vpop.permute.xlu1 %938 }
 0x13a   :  { %3065 = vst [vmem:[#allocation27_spill] sm:$0xff] %v2070_v10  ;;  %3066 = vst [vmem:[#allocation28_spill] sm:$0xff] %v2072_v1 }
 0x13b   :  { %998 = vrot.lane.b32.xlu1 %v993_v12, %s1727_s7 }
 0x13d   :  { %v2076_v16 = vpop.permute.xlu0 %197  ;;  %v2078_v18 = vpop.permute.xlu1 %195 }
 0x13e   :  { %v372_v39 = vsel %vm369_vm12, %v1899_v15, %v2076_v16  ;;  %v200_v17 = vsel %vm199_vm3, %v2032_v40, %v2078_v18 }
 0x13f   :  { %1085 = vrot.lane.b32.xlu1 %v1081_v20, %s1727_s7  ;;  %v2120_v20 = vunpack.i.h.bf16 %v1865_v59 }
 0x141   :  { %v2082_v23 = vpop.permute.xlu0 %210  ;;  %v2084_v24 = vpop.permute.xlu1 %212  ;;  %3067 = vst [vmem:[#allocation29_spill] sm:$0xff] %v2120_v20 }
 0x142   :  { %v376_v48 = vsel %vm373_vm13, %v372_v39, %v2084_v24  ;;  %v215_v40 = vsel %vm214_vm4, %v2043_v46, %v2082_v23 }
 0x145   :  { %v2086_v28 = vpop.permute.xlu0 %227  ;;  %v2088_v32 = vpop.permute.xlu1 %225 }
 0x146   :  { %v380_v49 = vsel %vm377_vm14, %v376_v48, %v2086_v28 }
 0x149   :  { %v2090_v33 = vpop.permute.xlu0 %240  ;;  %v2092_v38 = vpop.permute.xlu1 %242 }
 0x14a   :  { %v383_v50 = vsel %vm133_vm0, %v380_v49, %v2092_v38 }
 0x14d   :  { %v2097_v41 = vpop.permute.xlu0 %257  ;;  %v2099_v45 = vpop.permute.xlu1 %255 }
 0x14e   :  { %v387_v58 = vsel %vm3043_vm15, %v383_v50, %v2097_v41 }
 0x151   :  { %v2109_v15 = vpop.permute.xlu0 %270  ;;  %v2112_v63 = vpop.permute.xlu1 %272 }
 0x152   :  { %v391_v0 = vsel %vm388_vm1, %v387_v58, %v2112_v63 }
 0x153   :  { %v2117_v12 = vsel %vm3041_vm2, %v391_v0, %v284_v60 }
 0x154   :  { %v450_v39 = vmul.f32 %v1856_v54, %v2117_v12 }
 0x155   :  { %v2124_v48 = vpop.permute.xlu0 %292  ;;  %v2126_v49 = vpop.permute.xlu1 %290 }
 0x156   :  { %v467_v36 = vmul.f32 %v2120_v20, %v450_v39 }
 0x158   :  { %481 = vrot.lane.b32.xlu0 %v467_v36, %s1729_s11 }
 0x159   :  { %v2130_v50 = vpop.permute.xlu0 %316  ;;  %v2132_v58 = vpop.permute.xlu1 %302 }
 0x15d   :  { %v2134_v60 = vpop.permute.xlu0 %344  ;;  %v2136_v0 = vpop.permute.xlu1 %330 }
 0x15e   :  { %3068 = vst [vmem:[#allocation30_spill] sm:$0xff] %v2136_v0  ;;  %v370_v0 = vsel %vm369_vm12, %v1859_v56, %v200_v17  ;;  %v517_v56 = vmul.f32 %v1878_v3, %v2117_v12  ;;  %v584_v17 = vmul.f32 %v1917_v25, %v2117_v12 }
 0x161   :  { %v2138_v29 = vpop.permute.xlu0 %940  ;;  %v2140_v10 = vpop.permute.xlu1 %358 }
 0x162   :  { %3069 = vst [vmem:[#allocation31_spill] sm:$0xff] %v2138_v29  ;;  %3070 = vst [vmem:[#allocation32_spill] sm:$0xff] %v2140_v10 }
 0x165   :  { %v2142_v1 = vpop.permute.xlu0 %304  ;;  %v2144_v51 = vpop.permute.xlu1 %942 }
 0x166   :  { %3071 = vst [vmem:[#allocation33_spill] sm:$0xff] %v2144_v51 }
 0x169   :  { %v2146_v39 = vpop.permute.xlu0 %320  ;;  %v2148_v52 = vpop.permute.xlu1 %954 }
 0x16a   :  { %3072 = vst [vmem:[#allocation34_spill] sm:$0xff] %v2148_v52 }
 0x16d   :  { %v2150_v36 = vpop.permute.xlu0 %332  ;;  %v2152_v14 = vpop.permute.xlu1 %306 }
 0x16e   :  { %v398_v51 = vsel %vm369_vm12, %v2124_v48, %v2152_v14 }
 0x16f   :  { %v401_v42 = vsel %vm373_vm13, %v398_v51, %v2146_v39 }
 0x171   :  { %v2154_v21 = vpop.permute.xlu0 %348  ;;  %v2156_v8 = vpop.permute.xlu1 %318 }
 0x175   :  { %v2158_v11 = vpop.permute.xlu0 %360  ;;  %v2160_v29 = vpop.permute.xlu1 %334 }
 0x176   :  { %v404_v9 = vsel %vm377_vm14, %v401_v42, %v2160_v29 }
 0x177   :  { %v407_v51 = vsel %vm133_vm0, %v404_v9, %v2154_v21 }
 0x179   :  { %v2167_v52 = vpop.permute.xlu0 %956  ;;  %v2169_v43 = vpop.permute.xlu1 %346 }
 0x17a   :  { %3073 = vst [vmem:[#allocation35_spill] sm:$0xff] %v2167_v52  ;;  %v2183_v52 = vunpack.i.h.bf16 %v1882_v4  ;;  %v230_v4 = vsel %vm229_vm5, %v2045_v47, %v2088_v32  ;;  %v374_v47 = vsel %vm373_vm13, %v370_v0, %v215_v40  ;;  %v216_v0 = vsel %vm214_vm4, %v2082_v23, %v2084_v24 }
 0x17b   :  { %v231_v40 = vsel %vm229_vm5, %v2088_v32, %v2086_v28  ;;  %v246_v28 = vsel %vm244_vm6, %v2090_v33, %v2092_v38  ;;  %v651_v38 = vmul.f32 %v1886_v6, %v2117_v12 }
 0x17c   :  { %3075 = vst [vmem:[#allocation37_spill] sm:$0xff] %v2183_v52 }
 0x17d   :  { %v2176_v10 = vpop.permute.xlu0 %1029  ;;  %v2180_v59 = vpop.permute.xlu1 %362 }
 0x17e   :  { %3074 = vst [vmem:[#allocation36_spill] sm:$0xff] %v2176_v10  ;;  %v2187_v42 = vsel %vm3043_vm15, %v407_v51, %v2180_v59  ;;  %v245_v51 = vsel %vm244_vm6, %v2052_v55, %v2090_v33  ;;  %v201_v55 = vsel %vm199_vm3, %v2078_v18, %v2076_v16  ;;  %v282_v33 = vrot.slane %v1876_v2, 1 }
 0x17f   :  { %v453_v10 = vmul.f32 %v1854_v53, %v2187_v42  ;;  %v520_v9 = vmul.f32 %v1909_v22, %v2187_v42  ;;  %v587_v18 = vmul.f32 %v1884_v5, %v2187_v42  ;;  %v654_v23 = vmul.f32 %v1933_v34, %v2187_v42 }
 0x180   :  { %v371_v24 = vsel %vm369_vm12, %v1896_v13, %v201_v55  ;;  %v276_v2 = vsel %vm3044_vm8, %v2109_v15, %v2112_v63  ;;  %v323_v63 = vsel %vm229_vm5, %v2156_v8, %v2146_v39 }
 0x181   :  { %v2204_v46 = vpop.permute.xlu0 %1041  ;;  %v2206_v54 = vpop.permute.xlu1 %1027  ;;  %v470_v53 = vmul.f32 %v2120_v20, %v453_v10  ;;  %v537_v22 = vmul.f32 %v2183_v52, %v520_v9  ;;  %v260_v10 = vsel %vm259_vm7, %v2054_v57, %v2099_v45  ;;  %v2254_v9 = vunpack.i.h.bf16 %v1888_v7 }
 0x182   :  { %3076 = vst [vmem:[#allocation38_spill] sm:$0xff] %v2204_v46  ;;  %v378_v46 = vsel %vm377_vm14, %v374_v47, %v230_v4  ;;  %v275_v4 = vsel %vm3044_vm8, %v2064_v62, %v2109_v15  ;;  %v604_v47 = vmul.f32 %v2216_v27, %v587_v18  ;;  %v295_v15 = vsel %vm199_vm3, %v2126_v49, %v2124_v48 }
 0x183   :  { %487 = vrot.lane.b32.xlu1 %v470_v53, %s1729_s11  ;;  %554 = vrot.lane.b32.xlu0 %v537_v22, %s1730_s12  ;;  %v381_v16 = vsel %vm133_vm0, %v378_v46, %v245_v51  ;;  %v534_v53 = vmul.f32 %v2183_v52, %v517_v56  ;;  %v601_v22 = vmul.f32 %v2216_v27, %v584_v17 }
 0x184   :  { %v385_v62 = vsel %vm3043_vm15, %v381_v16, %v260_v10  ;;  %3078 = vst [vmem:[#allocation40_spill] sm:$0xff] %v2254_v9  ;;  %v375_v51 = vsel %vm373_vm13, %v371_v24, %v216_v0  ;;  %v261_v46 = vsel %vm259_vm7, %v2099_v45, %v2097_v41  ;;  %v671_v41 = vmul.f32 %v2254_v9, %v654_v23 }
 0x185   :  { %v2237_v57 = vpop.permute.xlu0 %1045  ;;  %v2251_v32 = vpop.permute.xlu1 %1031  ;;  %v389_v56 = vsel %vm388_vm1, %v385_v62, %v275_v4  ;;  %v379_v13 = vsel %vm377_vm14, %v375_v51, %v231_v40  ;;  %v718_v45 = vmul.f32 %v2015_v26, %v2117_v12  ;;  %v283_v0 = vrot.slane %v1936_v35, 1  ;;  %v3081_v51 = vld [vmem:[#allocation26_spill] sm:$0xff] }
 0x186   :  { %v382_v17 = vsel %vm133_vm0, %v379_v13, %v246_v28  ;;  %v2274_v10 = vsel %vm3041_vm2, %v389_v56, %v282_v33  ;;  %v2283_v16 = vunpack.i.h.bf16 %v2026_v37  ;;  %v294_v4 = vsel %vm199_vm3, %v2062_v61, %v2126_v49  ;;  %v3082_v56 = vld [vmem:[#allocation16_spill] sm:$0xff] }
 0x187   :  { %548 = vrot.lane.b32.xlu1 %v534_v53, %s1730_s12  ;;  %615 = vrot.lane.b32.xlu0 %v601_v22, %s1731_s13  ;;  %v386_v55 = vsel %vm3043_vm15, %v382_v17, %v261_v46  ;;  %v308_v53 = vsel %vm214_vm4, %v2132_v58, %v2142_v1  ;;  %v309_v35 = vsel %vm214_vm4, %v2142_v1, %v2152_v14 }
 0x188   :  { %3079 = vst [vmem:[#allocation41_spill] sm:$0xff] %v2283_v16  ;;  %v322_v61 = vsel %vm229_vm5, %v2130_v50, %v2156_v8  ;;  %v668_v14 = vmul.f32 %v2254_v9, %v651_v38  ;;  %v337_v1 = vsel %vm244_vm6, %v2150_v36, %v2160_v29  ;;  %v735_v22 = vmul.f32 %v2283_v16, %v718_v45  ;;  %v3084_v45 = vld [vmem:[#allocation17_spill] sm:$0xff] }
 0x189   :  { %v2280_v40 = vpop.permute.xlu0 %968  ;;  %v2305_v58 = vpop.permute.xlu1 %1043  ;;  %v721_v48 = vmul.f32 %v2005_v19, %v2187_v42  ;;  %v788_v49 = vmul.f32 %v2039_v44, %v2187_v42  ;;  %v390_v50 = vsel %vm388_vm1, %v386_v55, %v276_v2  ;;  %v396_v8 = vsel %vm369_vm12, %v294_v4, %v308_v53  ;;  %v3086_v2 = vld [vmem:[#allocation32_spill] sm:$0xff] }
 0x18a   :  { %v397_v39 = vsel %vm369_vm12, %v295_v15, %v309_v35  ;;  %v351_v18 = vsel %vm259_vm7, %v2169_v43, %v2154_v21  ;;  %v2323_v29 = vunpack.i.h.bf16 %v2022_v30  ;;  %v399_v23 = vsel %vm373_vm13, %v396_v8, %v322_v61  ;;  %v3087_v35 = vld [vmem:[#allocation15_spill] sm:$0xff] }
 0x18b   :  { %621 = vrot.lane.b32.xlu1 %v604_v47, %s1731_s13  ;;  %688 = vrot.lane.b32.xlu0 %v671_v41, %s1732_s14  ;;  %v400_v24 = vsel %vm373_vm13, %v397_v39, %v323_v63  ;;  %v365_v42 = vsel %vm3044_vm8, %v2158_v11, %v2180_v59  ;;  %v350_v21 = vsel %vm259_vm7, %v2134_v60, %v2169_v43  ;;  %v3083_v59 = vld [vmem:[#allocation30_spill] sm:$0xff]  ;;  %v2358_v55 = vunpack.i.l.bf16 %v3084_v45 }
 0x18c   :  { %3080 = vst [vmem:[#allocation42_spill] sm:$0xff] %v2323_v29  ;;  %v403_v28 = vsel %vm377_vm14, %v400_v24, %v337_v1  ;;  %v785_v46 = vmul.f32 %v3081_v51, %v2117_v12  ;;  %v448_v13 = vmul.f32 %v3082_v56, %v2274_v10  ;;  %v336_v33 = vsel %vm244_vm6, %v3083_v59, %v2150_v36  ;;  %v3088_v1 = vld [vmem:[#allocation18_spill] sm:$0xff] }
 0x18d   :  { %v2336_v62 = vpop.permute.xlu0 %1055  ;;  %v406_v38 = vsel %vm133_vm0, %v403_v28, %v351_v18  ;;  %v738_v17 = vmul.f32 %v2283_v16, %v721_v48  ;;  %v805_v47 = vmul.f32 %v2323_v29, %v788_v49  ;;  %v2349_v43 = vsel %vm3041_vm2, %v390_v50, %v283_v0  ;;  %v2355_v41 = vpop.permute.xlu1 %966  ;;  %3085 = vst [vmem:[#allocation26_spill] sm:$0xff] %v2358_v55  ;;  %v3092_v28 = vld [vmem:[#allocation20_spill] sm:$0xff] }
 0x18e   :  { %v402_v60 = vsel %vm377_vm14, %v399_v23, %v336_v33  ;;  %v2353_v12 = vsel %vm3043_vm15, %v406_v38, %v365_v42  ;;  %v802_v0 = vmul.f32 %v2323_v29, %v785_v46  ;;  %v364_v4 = vsel %vm3044_vm8, %v3086_v2, %v2158_v11 }
 0x18f   :  { %682 = vrot.lane.b32.xlu1 %v668_v14, %s1732_s14  ;;  %749 = vrot.lane.b32.xlu0 %v735_v22, %s1733_s15  ;;  %v405_v36 = vsel %vm133_vm0, %v402_v60, %v350_v21  ;;  %v465_v53 = vmul.f32 %v2358_v55, %v448_v13  ;;  %v452_v15 = vmul.f32 %v3087_v35, %v2353_v12  ;;  %v2380_v22 = vunpack.i.l.bf16 %v3088_v1 }
 0x190   :  { %v449_v61 = vmul.f32 %v3082_v56, %v2349_v43  ;;  %v2373_v63 = vsel %vm3043_vm15, %v405_v36, %v364_v4  ;;  %v2386_v48 = vsel %vm460_vm9, %v2358_v55, %v2120_v20  ;;  %v516_v8 = vmul.f32 %v1878_v3, %v2349_v43 }
 0x191   :  { %v2375_v14 = vpop.permute.xlu0 %1059  ;;  %3089 = vst [vmem:[#allocation16_spill] sm:$0xff] %v2380_v22  ;;  %v2382_v11 = vpop.permute.xlu1 %970  ;;  %3090 = vst [vmem:[#allocation30_spill] sm:$0xff] %v2386_v48  ;;  %v469_v49 = vmul.f32 %v2386_v48, %v452_v15  ;;  %v451_v39 = vmul.f32 %v3087_v35, %v2373_v63  ;;  %v2400_v23 = vsel %vm527_vm10, %v2380_v22, %v2183_v52  ;;  %vm661_vm9 = vcmask 31744  }
 0x192   :  { %v466_v50 = vmul.f32 %v2386_v48, %v449_v61  ;;  %3091 = vst [vmem:[#allocation17_spill] sm:$0xff] %v2400_v23  ;;  %v533_v24 = vmul.f32 %v2400_v23, %v516_v8  ;;  %v518_v21 = vmul.f32 %v3092_v28, %v2373_v63  ;;  %v515_v46 = vmul.f32 %v1878_v3, %v2274_v10 }
 0x193   :  { %755 = vrot.lane.b32.xlu1 %v738_v17, %s1733_s15  ;;  %822 = vrot.lane.b32.xlu0 %v805_v47, %s1734_s16  ;;  %v468_v42 = vmul.f32 %v2358_v55, %v451_v39  ;;  %v582_v33 = vmul.f32 %v1917_v25, %v2274_v10  ;;  %v519_v38 = vmul.f32 %v3092_v28, %v2353_v12  ;;  %v2423_v3 = vunpack.i.l.bf16 %v1925_v31  ;;  %v3120_v55 = vld [vmem:[#allocation13_spill] sm:$0xff] }
 0x194   :  { %v535_v13 = vmul.f32 %v2380_v22, %v518_v21  ;;  %v532_v59 = vmul.f32 %v2380_v22, %v515_v46  ;;  %v586_v36 = vmul.f32 %v1884_v5, %v2353_v12  ;;  %v2438_v31 = vunpack.i.l.bf16 %v1888_v7  ;;  %v3118_v22 = vld [vmem:[#allocation11_spill] sm:$0xff] }
 0x195   :  { %v2396_v18 = vpop.permute.xlu0 %980  ;;  %v2408_v56 = vpop.permute.xlu1 %1057  ;;  %3094 = vst [vmem:[#allocation15_spill] sm:$0xff] %v2423_v3  ;;  %v599_v60 = vmul.f32 %v2423_v3, %v582_v33  ;;  %v536_v45 = vmul.f32 %v2400_v23, %v519_v38  ;;  %v650_v15 = vmul.f32 %v1886_v6, %v2349_v43  ;;  %v585_v61 = vmul.f32 %v1884_v5, %v2373_v63  ;;  %v3117_v23 = vld [vmem:[#allocation12_spill] sm:$0xff] }
 0x196   :  { %3095 = vst [vmem:[#allocation18_spill] sm:$0xff] %v2438_v31  ;;  %v652_v39 = vmul.f32 %v1933_v34, %v2373_v63  ;;  %v649_v5 = vmul.f32 %v1886_v6, %v2274_v10  ;;  %v716_v21 = vmul.f32 %v2015_v26, %v2274_v10  ;;  %v653_v46 = vmul.f32 %v1933_v34, %v2353_v12 }
 0x197   :  { %816 = vrot.lane.b32.xlu1 %v802_v0, %s1734_s16  ;;  %477 = vrot.lane.b32.xlu0 %v465_v53, %s1729_s11  ;;  %v583_v0 = vmul.f32 %v1917_v25, %v2349_v43  ;;  %v2444_v53 = vsel %vm594_vm11, %v2423_v3, %v2216_v27  ;;  %v602_v8 = vmul.f32 %v2423_v3, %v585_v61  ;;  %v2479_v6 = vunpack.i.l.bf16 %v2026_v37 }
 0x198   :  { %3097 = vst [vmem:[#allocation43_spill] sm:$0xff] %v2444_v53  ;;  %v603_v35 = vmul.f32 %v2444_v53, %v586_v36  ;;  %v666_v28 = vmul.f32 %v2438_v31, %v649_v5  ;;  %vm728_vm10 = vcmask 39936   ;;  %v720_v34 = vmul.f32 %v2005_v19, %v2353_v12 }
 0x199   :  { %v2418_v17 = vpop.permute.xlu0 %984  ;;  %v600_v25 = vmul.f32 %v2444_v53, %v583_v0  ;;  %3102 = vst [vmem:[#allocation48_spill] sm:$0xff] %v2479_v6  ;;  %v733_v38 = vmul.f32 %v2479_v6, %v716_v21  ;;  %v2501_v0 = vunpack.i.l.bf16 %v2022_v30  ;;  %vm795_vm11 = vcmask 48128   ;;  %v3109_v21 = vld [vmem:[#allocation25_spill] sm:$0xff] }
 0x19a   :  { %v719_v61 = vmul.f32 %v2005_v19, %v2373_v63  ;;  %v783_v5 = vmul.f32 %v3081_v51, %v2274_v10  ;;  %v60_v52 = vadd.s32 4294967293, %v3117_v23  ;;  %vm556_vm2 = vcmask 1031168  }
 0x19b   :  { %485 = vrot.lane.b32.xlu0 %v469_v49, %s1729_s11  ;;  %479 = vrot.lane.b32.xlu1 %v466_v50, %s1729_s11  ;;  %v2460_v49 = vsel %vm661_vm9, %v2438_v31, %v2254_v9  ;;  %3106 = vst [vmem:[#allocation52_spill] sm:$0xff] %v2501_v0  ;;  %v2517_v30 = vsel %vm795_vm11, %v2501_v0, %v2323_v29  ;;  %vm489_vm11 = vcmask 1039360   ;;  %vm757_vm15 = vcmask 1006592  }
 0x19c   :  { %3100 = vst [vmem:[#allocation46_spill] sm:$0xff] %v2460_v49  ;;  %v667_v50 = vmul.f32 %v2460_v49, %v650_v15  ;;  %v784_v15 = vmul.f32 %v3081_v51, %v2349_v43  ;;  %3108 = vst [vmem:[#allocation54_spill] sm:$0xff] %v2517_v30  ;;  %v1563_v51 = vld [vmem:[%s2963_s0 + $0x28] sm:$0x3f]  ;;  %vm62_vm9 = vcmp.ge.s32.totalorder %v60_v52, 0  ;;  %vm824_vm8 = vcmask 998400  }
 0x19d   :  { %v2440_v4 = vpop.permute.xlu0 %1071 }
 0x19e   :  { %3096 = vst [vmem:[#allocation20_spill] sm:$0xff] %v2440_v4 }
 0x19f   :  { %546 = vrot.lane.b32.xlu0 %v533_v24, %s1730_s12  ;;  %483 = vrot.lane.b32.xlu1 %v468_v42, %s1729_s11  ;;  %v669_v42 = vmul.f32 %v2438_v31, %v652_v39  ;;  %v786_v39 = vmul.f32 %v2039_v44, %v2373_v63 }
 0x1a1   :  { %v803_v19 = vmul.f32 %v2501_v0, %v786_v39  ;;  %v1564_v39 = vld [vmem:[%s2963_s0 + $0x30] sm:$0xff] }
 0x1a2   :  { %v2420_v47 = vpop.permute.xlu1 %1177 }
 0x1a3   :  { %3093 = vst [vmem:[#allocation32_spill] sm:$0xff] %v2420_v47  ;;  %550 = vrot.lane.b32.xlu0 %v535_v13, %s1730_s12  ;;  %544 = vrot.lane.b32.xlu1 %v532_v59, %s1730_s12  ;;  %v423_v47 = vmul.f32 %v3120_v55, %v2274_v10 }
 0x1a6   :  { %v2433_v2 = vpop.permute.xlu1 %982 }
 0x1a7   :  { %611 = vrot.lane.b32.xlu0 %v599_v60, %s1731_s13  ;;  %552 = vrot.lane.b32.xlu1 %v536_v45, %s1730_s12  ;;  %v670_v60 = vmul.f32 %v2460_v49, %v653_v46  ;;  %v717_v45 = vmul.f32 %v2015_v26, %v2349_v43  ;;  %v1082_v46 = vrot.slane %v3109_v21, 4 }
 0x1aa   :  { %v2452_v1 = vpop.permute.xlu1 %1069  ;;  %v2456_v7 = vpop.permute.xlu0 %1172 }
 0x1ab   :  { %3098 = vst [vmem:[#allocation44_spill] sm:$0xff] %v2452_v1  ;;  %619 = vrot.lane.b32.xlu0 %v603_v35, %s1731_s13  ;;  %613 = vrot.lane.b32.xlu1 %v600_v25, %s1731_s13  ;;  %3099 = vst [vmem:[#allocation45_spill] sm:$0xff] %v2456_v7  ;;  %v2505_v35 = vsel %vm728_vm10, %v2479_v6, %v2283_v16  ;;  %v59_v7 = vadd.s32 4294967293, %v3118_v22 }
 0x1ac   :  { %3107 = vst [vmem:[#allocation53_spill] sm:$0xff] %v2505_v35  ;;  %v737_v26 = vmul.f32 %v2505_v35, %v720_v34  ;;  %v734_v25 = vmul.f32 %v2505_v35, %v717_v45  ;;  %v3112_v34 = vld [vmem:[#allocation21_spill] sm:$0xff] }
 0x1ad   :  { %v1006_v45 = vrot.slane %v3112_v34, 2  ;;  %vm61_vm10 = vcmp.ge.s32.totalorder %v59_v7, 0 }
 0x1ae   :  { %v2468_v24 = vpop.permute.xlu1 %1073  ;;  %v997_v13 = vpop.permute.xlu0 %996 }
 0x1af   :  { %3101 = vst [vmem:[#allocation47_spill] sm:$0xff] %v2468_v24  ;;  %680 = vrot.lane.b32.xlu0 %v667_v50, %s1732_s14  ;;  %617 = vrot.lane.b32.xlu1 %v602_v8, %s1731_s13  ;;  %v801_v50 = vmul.f32 %v2517_v30, %v784_v15  ;;  %v736_v8 = vmul.f32 %v2479_v6, %v719_v61  ;;  %v3114_v15 = vld [vmem:[#allocation23_spill] sm:$0xff] }
 0x1b0   :  { %v1094_v61 = vrot.slane %v3114_v15, 3 }
 0x1b2   :  { %v995_v59 = vpop.permute.xlu1 %994 }
 0x1b3   :  { %v2482_v33 = vsel %vm259_vm7, %v995_v59, %v997_v13  ;;  %684 = vrot.lane.b32.xlu0 %v669_v42, %s1732_s14  ;;  %678 = vrot.lane.b32.xlu1 %v666_v28, %s1732_s14  ;;  %v800_v42 = vmul.f32 %v2501_v0, %v783_v5  ;;  %v787_v28 = vmul.f32 %v2039_v44, %v2353_v12  ;;  %v3110_v59 = vld [vmem:[#allocation19_spill] sm:$0xff]  ;;  %v3111_v44 = vld [vmem:[#allocation22_spill] sm:$0xff] }
 0x1b4   :  { %3103 = vst [vmem:[#allocation49_spill] sm:$0xff] %v2482_v33  ;;  %v1565_v5 = vld [vmem:[%s2963_s0 + $0x38] sm:$0x3f] }
 0x1b6   :  { %v2492_v37 = vpop.permute.xlu1 %998 }
 0x1b7   :  { %3104 = vst [vmem:[#allocation50_spill] sm:$0xff] %v2492_v37  ;;  %v2496_v36 = vsel %vm259_vm7, %v997_v13, %v2492_v37  ;;  %745 = vrot.lane.b32.xlu0 %v733_v38, %s1733_s15  ;;  %686 = vrot.lane.b32.xlu1 %v670_v60, %s1732_s14  ;;  %v804_v13 = vmul.f32 %v2517_v30, %v787_v28  ;;  %v1005_v38 = vrot.slane %v3110_v59, 2  ;;  %v1007_v60 = vrot.slane %v3111_v44, 2  ;;  %v1568_v28 = vld [vmem:[%s2963_s0 + $0x50] sm:$0xff] }
 0x1b8   :  { %3105 = vst [vmem:[#allocation51_spill] sm:$0xff] %v2496_v36  ;;  %v424_v36 = vmul.f32 %v3120_v55, %v2349_v43 }
 0x1bb   :  { %753 = vrot.lane.b32.xlu0 %v737_v26, %s1733_s15  ;;  %747 = vrot.lane.b32.xlu1 %v734_v25, %s1733_s15  ;;  %v3113_v26 = vld [vmem:[#allocation24_spill] sm:$0xff] }
 0x1bc   :  { %v1095_v25 = vrot.slane %v3113_v26, 3 }
 0x1bf   :  { %814 = vrot.lane.b32.xlu0 %v801_v50, %s1734_s16  ;;  %751 = vrot.lane.b32.xlu1 %v736_v8, %s1733_s15  ;;  %v1562_v50 = vld [vmem:[%s2963_s0 + $0x20] sm:$0xff]  ;;  %v1096_v8 = vrot.slane %v3109_v21, 3  ;;  %v3119_v21 = vld [vmem:[#allocation14_spill] sm:$0xff] }
 0x1c0   :  { %v426_v37 = vmul.f32 %v3119_v21, %v2353_v12  ;;  %v425_v52 = vmul.f32 %v3119_v21, %v2373_v63 }
 0x1c3   :  { %818 = vrot.lane.b32.xlu0 %v803_v19, %s1734_s16  ;;  %812 = vrot.lane.b32.xlu1 %v800_v42, %s1734_s16  ;;  %v1566_v19 = vld [vmem:[%s2963_s0 + $0x40] sm:$0xff]  ;;  %v1567_v42 = vld [vmem:[%s2963_s0 + $0x48] sm:$0x3f] }
 0x1c7   :  { %1087 = vrot.lane.b32.xlu0 %v1082_v46, %s1727_s7  ;;  %820 = vrot.lane.b32.xlu1 %v804_v13, %s1734_s16  ;;  %v1569_v46 = vld [vmem:[%s2963_s0 + $0x58] sm:$0x3f]  ;;  %v1570_v13 = vld [vmem:[%s2963_s0 + $0x60] sm:$0xff] }
 0x1cb   :  { %1008 = vrot.lane.b32.xlu0 %v1005_v38, %s1728_s8  ;;  %1231 = vperm.xlu1 %1600, %v1563_v51   ;;  %v1571_v51 = vld [vmem:[%s2963_s0 + $0x68] sm:$0x3f]  ;;  %v1144_v38 = vld [vmem:[%s2963_s0] sm:$0xff] }
 0x1cf   :  { %1012 = vrot.lane.b32.xlu0 %v1007_v60, %s1728_s8  ;;  %1010 = vrot.lane.b32.xlu1 %v1006_v45, %s1728_s8  ;;  %v1145_v60 = vld [vmem:[%s2963_s0 + $0x8] sm:$0x3f]  ;;  %v2585_v45 = vpop.permute.xlu0 %1083  ;;  %s2658_s0 = sld [smem:[#allocation2]] }
 0x1d0   :  { %3115 = vst [vmem:[#allocation19_spill] sm:$0xff] %v2585_v45  ;;  %v3121_v45 = vmov 0.0  }
 0x1d1   :  { %v2615_v22 = vsel %vm61_vm10, 1.0, %v3121_v45  ;;  %vm690_vm10 = vcmask 1014784  }
 0x1d2   :  { %3123 = vst [vmem:[#allocation24_spill] sm:$0xff] %v2615_v22  ;;  %v427_v23 = vmul.f32 %v423_v47, %v2615_v22  ;;  %v429_v1 = vmul.f32 %v425_v52, %v2615_v22 }
 0x1d3   :  { %1099 = vrot.lane.b32.xlu0 %v1095_v25, %s1728_s8  ;;  %1097 = vrot.lane.b32.xlu1 %v1094_v61, %s1728_s8  ;;  %v2587_v25 = vpop.permute.xlu1 %1085  ;;  %v482_v61 = vpop.permute.xlu0 %481 }
 0x1d4   :  { %3116 = vst [vmem:[#allocation22_spill] sm:$0xff] %v2587_v25  ;;  %v2612_v25 = vsel %vm62_vm9, 1.0, %v3121_v45  ;;  %vm623_vm9 = vcmask 1022976  }
 0x1d5   :  { %3122 = vst [vmem:[#allocation21_spill] sm:$0xff] %v2612_v25  ;;  %v430_v12 = vmul.f32 %v426_v37, %v2612_v25  ;;  %v428_v10 = vmul.f32 %v424_v36, %v2612_v25 }
 0x1d7   :  { %1226 = vperm.xlu0 %1599, %v1562_v50   ;;  %1101 = vrot.lane.b32.xlu1 %v1096_v8, %s1728_s8 }
 0x1db   :  { %1280 = vperm.xlu0 %1599, %v1564_v39   ;;  %1285 = vperm.xlu1 %1600, %v1565_v5  }
 0x1df   :  { %1334 = vperm.xlu0 %1599, %v1566_v19   ;;  %1339 = vperm.xlu1 %1600, %v1567_v42  }
 0x1e3   :  { %1388 = vperm.xlu0 %1599, %v1568_v28   ;;  %1393 = vperm.xlu1 %1600, %v1569_v46  }
 0x1e7   :  { %1442 = vperm.xlu0 %1599, %v1570_v13   ;;  %1447 = vperm.xlu1 %1600, %v1571_v51  }
 0x1eb   :  { %1148 = vperm.xlu0 %1599, %v1144_v38   ;;  %1153 = vperm.xlu1 %1600, %v1145_v60  }
 0x1f5   :  { %v488_v50 = vpop.permute.xlu1 %487  ;;  %v555_v8 = vpop.permute.xlu0 %554 }
 0x1f9   :  { %v549_v39 = vpop.permute.xlu1 %548  ;;  %v2589_v5 = vpop.permute.xlu0 %615 }
 0x1fd   :  { %v622_v19 = vpop.permute.xlu1 %621  ;;  %v2591_v42 = vpop.permute.xlu0 %688 }
 0x201   :  { %v2593_v28 = vpop.permute.xlu1 %682  ;;  %v2595_v46 = vpop.permute.xlu0 %749 }
 0x205   :  { %v2597_v13 = vpop.permute.xlu1 %755  ;;  %v2599_v51 = vpop.permute.xlu0 %822 }
 0x209   :  { %v2601_v38 = vpop.permute.xlu1 %816  ;;  %v478_v60 = vpop.permute.xlu0 %477 }
 0x20d   :  { %v486_v29 = vpop.permute.xlu0 %485  ;;  %v480_v30 = vpop.permute.xlu1 %479 }
 0x20e   :  { %v493_v55 = vsel %vm489_vm11, %v486_v29, %v488_v50  ;;  %v490_v4 = vsel %vm489_vm11, %v478_v60, %v480_v30  ;;  %v491_v63 = vsel %vm489_vm11, %v480_v30, %v482_v61 }
 0x20f   :  { %v501_v36 = vadd.f32 %v493_v55, %v430_v12  ;;  %v499_v60 = vadd.f32 %v491_v63, %v428_v10 }
 0x211   :  { %v547_v0 = vpop.permute.xlu0 %546  ;;  %v484_v16 = vpop.permute.xlu1 %483 }
 0x212   :  { %v492_v45 = vsel %vm489_vm11, %v484_v16, %v486_v29  ;;  %v558_v21 = vsel %vm556_vm2, %v547_v0, %v549_v39  ;;  %v498_v29 = vadd.f32 %v490_v4, %v427_v23 }
 0x213   :  { %v500_v50 = vadd.f32 %v492_v45, %v429_v1  ;;  %v566_v12 = vadd.f32 %v558_v21, %v499_v60 }
 0x215   :  { %v551_v35 = vpop.permute.xlu0 %550  ;;  %v545_v6 = vpop.permute.xlu1 %544 }
 0x216   :  { %v557_v52 = vsel %vm556_vm2, %v545_v6, %v547_v0 }
 0x217   :  { %v565_v39 = vadd.f32 %v557_v52, %v498_v29 }
 0x219   :  { %v612_v9 = vpop.permute.xlu0 %611  ;;  %v553_v49 = vpop.permute.xlu1 %552 }
 0x21a   :  { %v559_v37 = vsel %vm556_vm2, %v551_v35, %v553_v49  ;;  %v560_v47 = vsel %vm556_vm2, %v553_v49, %v555_v8 }
 0x21b   :  { %v567_v22 = vadd.f32 %v559_v37, %v500_v50  ;;  %v568_v35 = vadd.f32 %v560_v47, %v501_v36 }
 0x21d   :  { %v620_v31 = vpop.permute.xlu0 %619  ;;  %v614_v27 = vpop.permute.xlu1 %613 }
 0x21e   :  { %v627_v30 = vsel %vm623_vm9, %v620_v31, %v622_v19  ;;  %v624_v49 = vsel %vm623_vm9, %v612_v9, %v614_v27  ;;  %v625_v8 = vsel %vm623_vm9, %v614_v27, %v2589_v5 }
 0x21f   :  { %v635_v4 = vadd.f32 %v627_v30, %v568_v35  ;;  %v632_v23 = vadd.f32 %v624_v49, %v565_v39  ;;  %v633_v9 = vadd.f32 %v625_v8, %v566_v12  ;;  %v1021_v30 = vrot.slane %v3114_v15, 1  ;;  %v3125_v35 = vld [vmem:[#allocation28_spill] sm:$0xff]  ;;  %v3126_v8 = vld [vmem:[#allocation33_spill] sm:$0xff] }
 0x221   :  { %v681_v53 = vpop.permute.xlu0 %680  ;;  %v618_v3 = vpop.permute.xlu1 %617 }
 0x222   :  { %v626_v61 = vsel %vm623_vm9, %v618_v3, %v620_v31  ;;  %v692_v0 = vsel %vm690_vm10, %v681_v53, %v2593_v28 }
 0x223   :  { %v634_v19 = vadd.f32 %v626_v61, %v567_v22  ;;  %v700_v28 = vadd.f32 %v692_v0, %v633_v9  ;;  %v3124_v61 = vld [vmem:[#allocation31_spill] sm:$0xff] }
 0x224   :  { %v944_v49 = vsel %vm199_vm3, %v3125_v35, %v3124_v61  ;;  %v945_v12 = vsel %vm199_vm3, %v3124_v61, %v3126_v8  ;;  %v3128_v0 = vld [vmem:[#allocation27_spill] sm:$0xff] }
 0x225   :  { %v685_v48 = vpop.permute.xlu0 %684  ;;  %v679_v20 = vpop.permute.xlu1 %678  ;;  %v3135_v61 = vld [vmem:[#allocation19_spill] sm:$0xff] }
 0x226   :  { %v691_v3 = vsel %vm690_vm10, %v679_v20, %v681_v53 }
 0x227   :  { %v699_v22 = vadd.f32 %v691_v3, %v632_v23  ;;  %v3129_v3 = vld [vmem:[#allocation35_spill] sm:$0xff]  ;;  %v3130_v23 = vld [vmem:[#allocation36_spill] sm:$0xff] }
 0x228   :  { %v1033_v9 = vsel %vm199_vm3, %v2206_v54, %v3130_v23  ;;  %v1109_v54 = vsel %vm369_vm12, %v3112_v34, %v945_v12 }
 0x229   :  { %v746_v33 = vpop.permute.xlu0 %745  ;;  %v687_v24 = vpop.permute.xlu1 %686 }
 0x22a   :  { %v693_v1 = vsel %vm690_vm10, %v685_v48, %v687_v24  ;;  %v694_v6 = vsel %vm690_vm10, %v687_v24, %v2591_v42 }
 0x22b   :  { %v701_v48 = vadd.f32 %v693_v1, %v634_v19  ;;  %v702_v55 = vadd.f32 %v694_v6, %v635_v4  ;;  %v3127_v4 = vld [vmem:[#allocation34_spill] sm:$0xff] }
 0x22c   :  { %v958_v19 = vsel %vm214_vm4, %v3128_v0, %v3127_v4 }
 0x22d   :  { %v754_v7 = vpop.permute.xlu0 %753  ;;  %v748_v43 = vpop.permute.xlu1 %747 }
 0x22e   :  { %v761_v27 = vsel %vm757_vm15, %v754_v7, %v2597_v13  ;;  %v758_v24 = vsel %vm757_vm15, %v746_v33, %v748_v43  ;;  %v759_v42 = vsel %vm757_vm15, %v748_v43, %v2595_v46 }
 0x22f   :  { %v769_v45 = vadd.f32 %v761_v27, %v702_v55  ;;  %v766_v37 = vadd.f32 %v758_v24, %v699_v22  ;;  %v1034_v27 = vsel %vm199_vm3, %v3130_v23, %v2251_v32  ;;  %v972_v22 = vsel %vm229_vm5, %v2355_v41, %v2280_v40 }
 0x231   :  { %v815_v25 = vpop.permute.xlu0 %814  ;;  %v752_v16 = vpop.permute.xlu1 %751 }
 0x232   :  { %v760_v5 = vsel %vm757_vm15, %v752_v16, %v754_v7  ;;  %v826_v20 = vsel %vm824_vm8, %v815_v25, %v2601_v38  ;;  %v767_v7 = vadd.f32 %v759_v42, %v700_v28  ;;  %v1108_v42 = vsel %vm369_vm12, %v3110_v59, %v944_v49 }
 0x233   :  { %v768_v53 = vadd.f32 %v760_v5, %v701_v48  ;;  %v3131_v5 = vld [vmem:[#allocation38_spill] sm:$0xff]  ;;  %v1048_v48 = vsel %vm214_vm4, %v2305_v58, %v2237_v57  ;;  %v1110_v28 = vsel %vm369_vm12, %v3111_v44, %v3126_v8  ;;  %v1131_v44 = vsel %vm369_vm12, %v2251_v32, %v2237_v57 }
 0x234   :  { %v834_v46 = vadd.f32 %v826_v20, %v767_v7  ;;  %v1130_v41 = vsel %vm369_vm12, %v1034_v27, %v1048_v48  ;;  %v1062_v57 = vsel %vm229_vm5, %v2408_v56, %v2375_v14  ;;  %v986_v32 = vsel %vm244_vm6, %v2396_v18, %v2433_v2 }
 0x235   :  { %v813_v31 = vpop.permute.xlu1 %812  ;;  %v819_v10 = vpop.permute.xlu0 %818  ;;  %v1133_v12 = vsel %vm373_vm13, %v1130_v41, %v1062_v57 }
 0x236   :  { %v825_v63 = vsel %vm824_vm8, %v813_v31, %v815_v25  ;;  %v959_v31 = vsel %vm214_vm4, %v3127_v4, %v3129_v3 }
 0x237   :  { %v833_v43 = vadd.f32 %v825_v63, %v766_v37  ;;  %v1112_v34 = vsel %vm373_vm13, %v1109_v54, %v959_v31  ;;  %v973_v37 = vsel %vm229_vm5, %v2280_v40, %v2382_v11  ;;  %v987_v40 = vsel %vm244_vm6, %v2433_v2, %v2418_v17  ;;  %v3134_v2 = vld [vmem:[#allocation22_spill] sm:$0xff] }
 0x238   :  { %v1089_v35 = vsel %vm259_vm7, %v3135_v61, %v3134_v2 }
 0x239   :  { %v821_v13 = vpop.permute.xlu1 %820  ;;  %v2654_v50 = vpop.permute.xlu0 %1087 }
 0x23a   :  { %v827_v47 = vsel %vm824_vm8, %v819_v10, %v821_v13  ;;  %v828_v33 = vsel %vm824_vm8, %v821_v13, %v2599_v51  ;;  %v1022_v51 = vrot.slane %v3113_v26, 1  ;;  %v1047_v10 = vsel %vm214_vm4, %v3131_v5, %v2305_v58  ;;  %v3157_v26 = vld [vmem:[#allocation45_spill] sm:$0xff] }
 0x23b   :  { %v835_v36 = vadd.f32 %v827_v47, %v768_v53  ;;  %v836_v21 = vadd.f32 %v828_v33, %v769_v45  ;;  %v1111_v45 = vsel %vm373_vm13, %v1108_v42, %v958_v19  ;;  %v1113_v58 = vsel %vm373_vm13, %v1110_v28, %v3129_v3  ;;  %v3141_v28 = vld [vmem:[#allocation49_spill] sm:$0xff] }
 0x23c   :  { %v1129_v63 = vsel %vm369_vm12, %v1033_v9, %v1047_v10  ;;  %v1114_v13 = vsel %vm377_vm14, %v1111_v45, %v972_v22  ;;  %v1116_v18 = vsel %vm377_vm14, %v1113_v58, %v2382_v11  ;;  %vm3137_vm12 = vcmask 261120   ;;  %v3143_v45 = vld [vmem:[#allocation51_spill] sm:$0xff]  ;;  %v3145_v58 = vld [vmem:[#allocation32_spill] sm:$0xff] }
 0x23d   :  { %v837_v52 = vsel %vm388_vm1, %v835_v36, 0.0  ;;  %v845_v38 = vsel %vm388_vm1, %v836_v21, 0.0  ;;  %v1009_v6 = vpop.permute.xlu0 %1008  ;;  %v1061_v36 = vsel %vm229_vm5, %v2336_v62, %v2408_v56  ;;  %v2723_v21 = vstv %s2658_s0  ;;  %vm3139_vm3 = vmmov %vm3137_vm12 }
 0x23e   :  { %v838_v16 = vadd.f32 %v837_v52, %v833_v43  ;;  %v846_v25 = vadd.f32 %v845_v38, %v834_v46  ;;  %v3132_v46 = vld [vmem:[#allocation20_spill] sm:$0xff]  ;;  %v1134_v56 = vsel %vm373_vm13, %v1131_v44, %v2375_v14  ;;  %v1117_v14 = vsel %vm133_vm0, %v1114_v13, %v986_v32  ;;  %v3149_v32 = vld [vmem:[#allocation26_spill] sm:$0xff] }
 0x23f   :  { %v3133_v43 = vld [vmem:[#allocation44_spill] sm:$0xff]  ;;  %v1090_v48 = vsel %vm259_vm7, %v3134_v2, %v2654_v50  ;;  %vm3140_vm4 = vcmask 1044480   ;;  %v1119_v13 = vsel %vm133_vm0, %v1116_v18, %v2418_v17 }
 0x240   :  { %v839_v29 = vrot.slane %v838_v16, 4  ;;  %v847_v60 = vrot.slane %v846_v25, 4  ;;  %v1075_v52 = vsel %vm244_vm6, %v3133_v43, %v3132_v46  ;;  %vm3142_vm5 = vmmov %vm3140_vm4 }
 0x241   :  { %v1013_v33 = vpop.permute.xlu0 %1012  ;;  %v1120_v22 = vsel %vm3142_vm5, %v1117_v14, %v3141_v28  ;;  %vm3147_vm7 = vmmov %vm3140_vm4 }
 0x242   :  { %v840_v39 = vadd.f32 %v839_v29, %v838_v16  ;;  %v848_v1 = vadd.f32 %v847_v60, %v846_v25  ;;  %v1115_v25 = vsel %vm377_vm14, %v1112_v34, %v973_v37  ;;  %v2737_v29 = vstv %s2680_s21 }
 0x243   :  { %v1132_v60 = vsel %vm373_vm13, %v1129_v63, %v1061_v36  ;;  %vm3138_vm13 = vmmov %vm3137_vm12 }
 0x244   :  { %v841_v55 = vrot.slane %v840_v39, 2  ;;  %v849_v24 = vrot.slane %v848_v1, 2  ;;  %v1135_v11 = vsel %vm377_vm14, %v1132_v60, %v1075_v52 }
 0x245   :  { %v1100_v31 = vpop.permute.xlu0 %1099  ;;  %v1138_v9 = vsel %vm133_vm0, %v1135_v11, %v1089_v35 }
 0x246   :  { %v842_v20 = vadd.f32 %v841_v55, %v840_v39  ;;  %v850_v53 = vadd.f32 %v849_v24, %v848_v1  ;;  %v2701_v59 = vpop.permute.xlu1 %1231  ;;  %v1118_v39 = vsel %vm133_vm0, %v1115_v25, %v987_v40  ;;  %v3136_v1 = vld [vmem:[#allocation47_spill] sm:$0xff]  ;;  %v3156_v25 = vld [vmem:[#allocation30_spill] sm:$0xff] }
 0x247   :  { %v1076_v4 = vsel %vm244_vm6, %v3132_v46, %v3136_v1  ;;  %v1137_v0 = vsel %vm377_vm14, %v1134_v56, %v3136_v1  ;;  %vm3144_vm6 = vmmov %vm3140_vm4  ;;  %v3150_v46 = vld [vmem:[#allocation50_spill] sm:$0xff]  ;;  %v3155_v56 = vld [vmem:[#allocation29_spill] sm:$0xff] }
 0x248   :  { %v843_v7 = vrot.slane %v842_v20, 1  ;;  %v851_v47 = vrot.slane %v850_v53, 1  ;;  %v1136_v54 = vsel %vm377_vm14, %v1133_v12, %v1076_v4  ;;  %vm3146_vm14 = vmmov %vm3139_vm3  ;;  %v3159_v12 = vld [vmem:[#allocation16_spill] sm:$0xff] }
 0x249   :  { %v1139_v37 = vsel %vm133_vm0, %v1136_v54, %v1090_v48 }
 0x24a   :  { %v844_v38 = vadd.f32 %v843_v7, %v842_v20  ;;  %v852_v62 = vadd.f32 %v851_v47, %v850_v53  ;;  %v1011_v16 = vpop.permute.xlu1 %1010  ;;  %v1140_v7 = vsel %vm133_vm0, %v1137_v0, %v2654_v50 }
 0x24b   :  { %v1014_v27 = vsel %vm3137_vm12, %v1009_v6, %v1011_v16  ;;  %v1015_v5 = vsel %vm3138_vm13, %v1011_v16, %v1013_v33  ;;  %v1121_v6 = vsel %vm3144_vm6, %v1118_v39, %v3143_v45  ;;  %vm3148_vm12 = vmmov %vm3140_vm4  ;;  %v3154_v16 = vld [vmem:[#allocation25_spill] sm:$0xff] }
 0x24c   :  { %v854_v49 = vmul.f32 %v2723_v21, %v844_v38  ;;  %v855_v8 = vmul.f32 %v2723_v21, %v852_v62  ;;  %v1123_v44 = vsel %vm388_vm1, %v1120_v22, %v1014_v27  ;;  %v1124_v63 = vsel %vm388_vm1, %v1121_v6, %v1015_v5  ;;  %vm3151_vm13 = vmmov %vm3140_vm4  ;;  %v3161_v27 = vld [vmem:[#allocation17_spill] sm:$0xff]  ;;  %v3162_v6 = vld [vmem:[#allocation15_spill] sm:$0xff] }
 0x24d   :  { %v1122_v43 = vsel %vm3151_vm13, %v1119_v13, %v3150_v46  ;;  %v1023_v15 = vrot.slane %v3154_v16, 1 }
 0x24e   :  { %v857_v19 = vadd.f32 %v2737_v29, %v854_v49  ;;  %v858_v3 = vadd.f32 %v2737_v29, %v855_v8  ;;  %v1098_v23 = vpop.permute.xlu1 %1097  ;;  %v1125_v52 = vsel %vm388_vm1, %v1122_v43, %v1013_v33 }
 0x24f   :  { %v1103_v10 = vsel %vm3139_vm3, %v1098_v23, %v1100_v31  ;;  %vm3152_vm3 = vcmask 1046528   ;;  %v3160_v23 = vld [vmem:[#allocation37_spill] sm:$0xff] }
 0x250   :  { %v859_v55 = vsub.f32 0.0, %v857_v19  ;;  %v860_v24 = vsub.f32 0.0, %v858_v3  ;;  %v2764_v42 = vsel %vm3140_vm4, %v1138_v9, %v1103_v10  ;;  %v2793_v17 = vsel %vm3152_vm3, %v1123_v44, %v1021_v30  ;;  %vm3153_vm0 = vmmov %vm3152_vm3  ;;  %v3163_v44 = vld [vmem:[#allocation43_spill] sm:$0xff] }
 0x251   :  { %v1183_v20 = vmul.f32 %v3145_v58, %v2764_v42  ;;  %v2798_v50 = vsel %vm3153_vm0, %v1124_v63, %v1022_v51  ;;  %v1180_v33 = vmul.f32 %v3157_v26, %v2793_v17  ;;  %vm3158_vm4 = vmmov %vm3153_vm0  ;;  %v1237_v35 = vmul.f32 %v2701_v59, %v2764_v42 }
 0x252   :  { %v861_v53 = vmul.f32 1.442695, %v859_v55  ;;  %v863_v34 = vmul.f32 1.442695, %v860_v24  ;;  %v1102_v41 = vpop.permute.xlu1 %1101  ;;  %v1181_v51 = vmul.f32 %v3157_v26, %v2798_v50  ;;  %v2814_v60 = vsel %vm3158_vm4, %v1125_v52, %v1023_v15  ;;  %v1227_v8 = vpop.permute.xlu0 %1226 }
 0x253   :  { %v1104_v47 = vsel %vm3146_vm14, %v1100_v31, %v1102_v41  ;;  %v2785_v57 = vsel %vm3148_vm12, %v1140_v7, %v1102_v41  ;;  %v1189_v40 = vmul.f32 %v3149_v32, %v1183_v20  ;;  %v1186_v61 = vmul.f32 %v3149_v32, %v1180_v33  ;;  %v3164_v41 = vld [vmem:[#allocation39_spill] sm:$0xff]  ;;  %v3166_v33 = vld [vmem:[#allocation46_spill] sm:$0xff] }
 0x254   :  { %1633 = vpow2.f32 %v861_v53  ;;  %v2782_v36 = vsel %vm3147_vm7, %v1139_v37, %v1104_v47  ;;  %v1185_v38 = vmul.f32 %v3145_v58, %v2785_v57  ;;  %v1187_v2 = vmul.f32 %v1181_v51, %v3156_v25 }
 0x255   :  { %1635 = vpow2.f32 %v863_v34  ;;  %1204 = vrot.lane.b32.xlu1 %v1189_v40, %s1729_s11  ;;  %v1184_v62 = vmul.f32 %v3145_v58, %v2782_v36  ;;  %v1182_v49 = vmul.f32 %v3157_v26, %v2814_v60  ;;  %v1243_v14 = vmul.f32 %v3159_v12, %v1237_v35 }
 0x256   :  { %v1191_v30 = vmul.f32 %v3155_v56, %v1185_v38  ;;  %v1239_v11 = vmul.f32 %v2701_v59, %v2785_v57  ;;  %v1238_v1 = vmul.f32 %v2701_v59, %v2782_v36  ;;  %v1234_v3 = vmul.f32 %v1227_v8, %v2793_v17  ;;  %v1286_v48 = vpop.permute.xlu1 %1285  ;;  %v1281_v20 = vpop.permute.xlu0 %1280  ;;  %v1649_v38 = vld [vmem:[#allocation6] sm:$0xff] }
 0x257   :  { %v1190_v18 = vmul.f32 %v1184_v62, %v3156_v25  ;;  %v1188_v39 = vmul.f32 %v3155_v56, %v1182_v49  ;;  %v1235_v31 = vmul.f32 %v1227_v8, %v2798_v50  ;;  %v1236_v59 = vmul.f32 %v1227_v8, %v2814_v60 }
 0x258   :  { %v1245_v9 = vmul.f32 %v3160_v23, %v1239_v11  ;;  %v1244_v5 = vmul.f32 %v1238_v1, %v3161_v27  ;;  %v1240_v55 = vmul.f32 %v3159_v12, %v1234_v3  ;;  %v1291_v54 = vmul.f32 %v1286_v48, %v2764_v42 }
 0x259   :  { %1208 = vrot.lane.b32.xlu1 %v1191_v30, %s1729_s11  ;;  %1206 = vrot.lane.b32.xlu0 %v1190_v18, %s1729_s11  ;;  %v1241_v24 = vmul.f32 %v1235_v31, %v3161_v27  ;;  %v1242_v28 = vmul.f32 %v3160_v23, %v1236_v59  ;;  %v1292_v22 = vmul.f32 %v1286_v48, %v2782_v36  ;;  %v3165_v30 = vld [vmem:[#allocation18_spill] sm:$0xff] }
 0x25a   :  { %v1293_v45 = vmul.f32 %v1286_v48, %v2785_v57  ;;  %v1297_v58 = vmul.f32 %v3162_v6, %v1291_v54  ;;  %v1288_v53 = vmul.f32 %v1281_v20, %v2793_v17  ;;  %v1289_v34 = vmul.f32 %v1281_v20, %v2798_v50  ;;  %v1340_v7 = vpop.permute.xlu1 %1339  ;;  %v1335_v18 = vpop.permute.xlu0 %1334 }
 0x25b   :  { %v1298_v63 = vmul.f32 %v1292_v22, %v3163_v44  ;;  %v1290_v32 = vmul.f32 %v1281_v20, %v2814_v60  ;;  %v1345_v43 = vmul.f32 %v1340_v7, %v2764_v42  ;;  %v1346_v15 = vmul.f32 %v1340_v7, %v2782_v36 }
 0x25c   :  { %v1299_v13 = vmul.f32 %v3164_v41, %v1293_v45  ;;  %v1294_v40 = vmul.f32 %v3162_v6, %v1288_v53  ;;  %v1295_v46 = vmul.f32 %v1289_v34, %v3163_v44  ;;  %v1347_v56 = vmul.f32 %v1340_v7, %v2785_v57  ;;  %v3171_v6 = vld [vmem:[#allocation52_spill] sm:$0xff]  ;;  %v3172_v44 = vld [vmem:[#allocation54_spill] sm:$0xff] }
 0x25d   :  { %1200 = vrot.lane.b32.xlu1 %v1187_v2, %s1729_s11  ;;  %1198 = vrot.lane.b32.xlu0 %v1186_v61, %s1729_s11  ;;  %v1296_v16 = vmul.f32 %v3164_v41, %v1290_v32  ;;  %v1351_v25 = vmul.f32 %v3165_v30, %v1345_v43  ;;  %v1342_v26 = vmul.f32 %v1335_v18, %v2793_v17  ;;  %v3167_v61 = vld [vmem:[#allocation40_spill] sm:$0xff]  ;;  %v3173_v41 = vld [vmem:[#allocation42_spill] sm:$0xff] }
 0x25e   :  { %v1343_v51 = vmul.f32 %v1335_v18, %v2798_v50  ;;  %v1352_v2 = vmul.f32 %v1346_v15, %v3166_v33  ;;  %v1353_v35 = vmul.f32 %v3167_v61, %v1347_v56  ;;  %v1394_v49 = vpop.permute.xlu1 %1393  ;;  %v1344_v8 = vmul.f32 %v1335_v18, %v2814_v60  ;;  %v1389_v3 = vpop.permute.xlu0 %1388 }
 0x25f   :  { %v1348_v12 = vmul.f32 %v3165_v30, %v1342_v26  ;;  %v1400_v1 = vmul.f32 %v1394_v49, %v2782_v36  ;;  %v1396_v31 = vmul.f32 %v1389_v3, %v2793_v17  ;;  %v1397_v23 = vmul.f32 %v1389_v3, %v2798_v50 }
 0x260   :  { %v1350_v11 = vmul.f32 %v3167_v61, %v1344_v8  ;;  %v1398_v59 = vmul.f32 %v1389_v3, %v2814_v60 }
 0x261   :  { %v1634_v4 = vpop.eup %1633  ;;  %1258 = vrot.lane.b32.xlu1 %v1243_v14, %s1730_s12  ;;  %1202 = vrot.lane.b32.xlu0 %v1188_v39, %s1729_s11  ;;  %v1349_v14 = vmul.f32 %v1343_v51, %v3166_v33  ;;  %v1399_v39 = vmul.f32 %v1394_v49, %v2764_v42  ;;  %s1735_s11 = smov [#allocation7]  }
 0x262   :  { %v1636_v0 = vpop.eup %1635  ;;  %v865_v19 = vadd.f32 1.0, %v1634_v4  ;;  %v1401_v4 = vmul.f32 %v1394_v49, %v2785_v57  ;;  %v1448_v48 = vpop.permute.xlu1 %1447 }
 0x263   :  { %v866_v10 = vadd.f32 1.0, %v1636_v0  ;;  %v3168_v0 = vld [vmem:[#allocation48_spill] sm:$0xff]  ;;  %v1453_v54 = vmul.f32 %v1448_v48, %v2764_v42  ;;  %v1454_v22 = vmul.f32 %v1448_v48, %v2782_v36  ;;  %v1455_v45 = vmul.f32 %v1448_v48, %v2785_v57  ;;  %v1443_v20 = vpop.permute.xlu0 %1442 }
 0x264   :  { %1637 = vrcp.f32 %v865_v19  ;;  %v1405_v19 = vmul.f32 %v3168_v0, %v1399_v39  ;;  %v1450_v53 = vmul.f32 %v1443_v20, %v2793_v17  ;;  %v1451_v34 = vmul.f32 %v1443_v20, %v2798_v50 }
 0x265   :  { %1262 = vrot.lane.b32.xlu1 %v1245_v9, %s1730_s12  ;;  %1260 = vrot.lane.b32.xlu0 %v1244_v5, %s1730_s12  ;;  %1639 = vrcp.f32 %v866_v10  ;;  %v3169_v9 = vld [vmem:[#allocation53_spill] sm:$0xff]  ;;  %v1452_v57 = vmul.f32 %v1443_v20, %v2814_v60 }
 0x266   :  { %v1406_v27 = vmul.f32 %v1400_v1, %v3169_v9  ;;  %v3170_v5 = vld [vmem:[#allocation41_spill] sm:$0xff]  ;;  %v1457_v7 = vmul.f32 %v1451_v34, %v3172_v44  ;;  %v1154_v32 = vpop.permute.xlu1 %1153 }
 0x267   :  { %v1407_v10 = vmul.f32 %v3170_v5, %v1401_v4  ;;  %v1158_v4 = vmul.f32 %v1154_v32, %v2764_v42 }
 0x269   :  { %1254 = vrot.lane.b32.xlu1 %v1241_v24, %s1730_s12  ;;  %1252 = vrot.lane.b32.xlu0 %v1240_v55, %s1730_s12  ;;  %v1402_v55 = vmul.f32 %v3168_v0, %v1396_v31  ;;  %v1403_v24 = vmul.f32 %v1397_v23, %v3169_v9  ;;  %v1159_v31 = vmul.f32 %v1154_v32, %v2782_v36  ;;  %v3174_v9 = vld [vmem:[#allocation24_spill] sm:$0xff] }
 0x26d   :  { %1256 = vrot.lane.b32.xlu0 %v1242_v28, %s1730_s12  ;;  %1312 = vrot.lane.b32.xlu1 %v1297_v58, %s1731_s13  ;;  %v1404_v28 = vmul.f32 %v3170_v5, %v1398_v59  ;;  %v1459_v58 = vmul.f32 %v3171_v6, %v1453_v54  ;;  %s1534_s12 = sshll.u32 %s1735_s11, 4  ;;  %s1535_s12 = int_to_ptr.vmem [resolvable:$true] %s1534_s12 }
 0x26e   :  { %p1688_p11 = scmp.lt.s32.totalorder %s1535_s12, %s1535_s12 }
 0x271   :  { %v1638_v37 = vpop.eup %1637  ;;  %1314 = vrot.lane.b32.xlu0 %v1298_v63, %s1731_s13  ;;  %1316 = vrot.lane.b32.xlu1 %v1299_v13, %s1731_s13  ;;  %v1460_v63 = vmul.f32 %v1454_v22, %v3172_v44  ;;  %v1461_v13 = vmul.f32 %v3173_v41, %v1455_v45 }
 0x272   :  { %v1640_v47 = vpop.eup %1639 }
 0x273   :  { %v871_v52 = vcombine.low %v1638_v37, %v1640_v47  ;;  %v1456_v37 = vmul.f32 %v3171_v6, %v1450_v53  ;;  %v1458_v47 = vmul.f32 %v3173_v41, %v1452_v57 }
 0x275   :  { %1306 = vrot.lane.b32.xlu0 %v1294_v40, %s1731_s13  ;;  %1308 = vrot.lane.b32.xlu1 %v1295_v46, %s1731_s13  ;;  %v873_v62 = vmul.f32 %v1649_v38, %v871_v52  ;;  %v1149_v40 = vpop.permute.xlu0 %1148 }
 0x276   :  { %v1156_v3 = vmul.f32 %v1149_v40, %v2793_v17  ;;  %v1157_v42 = vmul.f32 %v1149_v40, %v2798_v50  ;;  %v3175_v17 = vld [vmem:[#allocation21_spill] sm:$0xff] }
 0x277   :  { %874 = vst [vmem:[#allocation7] sm:$0xff] %v873_v62 }
 0x278   :  { %v1160_v54 = vmul.f32 %v1156_v3, %v3174_v9  ;;  %v1161_v57 = vmul.f32 %v1157_v42, %v3175_v17 }
 0x279   :  { %1310 = vrot.lane.b32.xlu0 %v1296_v16, %s1731_s13  ;;  %1366 = vrot.lane.b32.xlu1 %v1351_v25, %s1732_s14  ;;  %s1683_s13 = scalar_lea.vmem %s1535_s12, 256 }
 0x27a   :  { %p1684_p10 = scmp.ne.s32.totalorder %s1535_s12, %s1683_s13  ;;  %p1689_p12 = scmp.lt.s32.totalorder %s1683_s13, %s1683_s13 }
 0x27c   :  { %p1690_p13 = por %p1689_p12, %p1688_p11 }
 0x27d   :  { %1368 = vrot.lane.b32.xlu0 %v1352_v2, %s1732_s14  ;;  %1370 = vrot.lane.b32.xlu1 %v1353_v35, %s1732_s14 }
 0x27e   :  { %p1691_p0 = pnand %p1690_p13, %p1684_p10 }
 0x281   :  { %1360 = vrot.lane.b32.xlu0 %v1348_v12, %s1732_s14  ;;  %1362 = vrot.lane.b32.xlu1 %v1349_v14, %s1732_s14 }
 0x285   :  { %1364 = vrot.lane.b32.xlu0 %v1350_v11, %s1732_s14  ;;  %1420 = vrot.lane.b32.xlu1 %v1405_v19, %s1733_s15 }
 0x289   :  { %1422 = vrot.lane.b32.xlu0 %v1406_v27, %s1733_s15  ;;  %1424 = vrot.lane.b32.xlu1 %v1407_v10, %s1733_s15  ;;  %v1162_v27 = vmul.f32 %v1158_v4, %v3174_v9 }
 0x28d   :  { %1414 = vrot.lane.b32.xlu0 %v1402_v55, %s1733_s15  ;;  %1416 = vrot.lane.b32.xlu1 %v1403_v24, %s1733_s15 }
 0x291   :  { %1418 = vrot.lane.b32.xlu0 %v1404_v28, %s1733_s15  ;;  %1474 = vrot.lane.b32.xlu1 %v1459_v58, %s1734_s16  ;;  %v1163_v28 = vmul.f32 %v1159_v31, %v3175_v17 }
 0x295   :  { %1476 = vrot.lane.b32.xlu0 %v1460_v63, %s1734_s16  ;;  %1478 = vrot.lane.b32.xlu1 %v1461_v13, %s1734_s16 }
 0x299   :  { %1468 = vrot.lane.b32.xlu0 %v1456_v37, %s1734_s16  ;;  %1470 = vrot.lane.b32.xlu1 %v1457_v7, %s1734_s16 }
 0x29d   :  { %1472 = vrot.lane.b32.xlu0 %v1458_v47, %s1734_s16 }
 0x2c7   :  { %v1205_v46 = vpop.permute.xlu1 %1204 }
 0x2cb   :  { %v1207_v43 = vpop.permute.xlu0 %1206  ;;  %v1209_v52 = vpop.permute.xlu1 %1208 }
 0x2cc   :  { %v1212_v23 = vsel %vm489_vm11, %v1205_v46, %v1207_v43  ;;  %v1213_v55 = vsel %vm489_vm11, %v1207_v43, %v1209_v52 }
 0x2cd   :  { %v1220_v59 = vadd.f32 %v1212_v23, %v1162_v27  ;;  %v1221_v58 = vadd.f32 %v1213_v55, %v1163_v28 }
 0x2cf   :  { %v1199_v38 = vpop.permute.xlu0 %1198  ;;  %v1201_v62 = vpop.permute.xlu1 %1200 }
 0x2d0   :  { %v1210_v24 = vsel %vm489_vm11, %v1199_v38, %v1201_v62 }
 0x2d1   :  { %v1218_v20 = vadd.f32 %v1210_v24, %v1160_v54 }
 0x2d3   :  { %v1203_v60 = vpop.permute.xlu0 %1202  ;;  %v1259_v16 = vpop.permute.xlu1 %1258 }
 0x2d4   :  { %v1211_v63 = vsel %vm489_vm11, %v1201_v62, %v1203_v60 }
 0x2d5   :  { %v1219_v43 = vadd.f32 %v1211_v63, %v1161_v57 }
 0x2d7   :  { %v1261_v15 = vpop.permute.xlu0 %1260  ;;  %v1263_v56 = vpop.permute.xlu1 %1262 }
 0x2d8   :  { %v1266_v5 = vsel %vm556_vm2, %v1259_v16, %v1261_v15  ;;  %v1267_v45 = vsel %vm556_vm2, %v1261_v15, %v1263_v56 }
 0x2d9   :  { %v1274_v22 = vadd.f32 %v1266_v5, %v1220_v59  ;;  %v1275_v37 = vadd.f32 %v1267_v45, %v1221_v58 }
 0x2db   :  { %v1253_v30 = vpop.permute.xlu0 %1252  ;;  %v1255_v25 = vpop.permute.xlu1 %1254 }
 0x2dc   :  { %v1264_v6 = vsel %vm556_vm2, %v1253_v30, %v1255_v25 }
 0x2dd   :  { %v1272_v7 = vadd.f32 %v1264_v6, %v1218_v20 }
 0x2df   :  { %v1257_v18 = vpop.permute.xlu0 %1256  ;;  %v1313_v26 = vpop.permute.xlu1 %1312 }
 0x2e0   :  { %v1265_v32 = vsel %vm556_vm2, %v1255_v25, %v1257_v18 }
 0x2e3   :  { %v1315_v51 = vpop.permute.xlu0 %1314  ;;  %v1317_v33 = vpop.permute.xlu1 %1316 }
 0x2e4   :  { %v1320_v36 = vsel %vm623_vm9, %v1313_v26, %v1315_v51  ;;  %v1321_v41 = vsel %vm623_vm9, %v1315_v51, %v1317_v33  ;;  %v1273_v51 = vadd.f32 %v1265_v32, %v1219_v43  ;;  %v1650_v43 = vld [vmem:[#allocation6 + $0x8] sm:$0xff] }
 0x2e5   :  { %v1328_v50 = vadd.f32 %v1320_v36, %v1274_v22  ;;  %v1329_v52 = vadd.f32 %v1321_v41, %v1275_v37 }
 0x2e7   :  { %v1307_v2 = vpop.permute.xlu0 %1306  ;;  %v1309_v61 = vpop.permute.xlu1 %1308 }
 0x2e8   :  { %v1318_v13 = vsel %vm623_vm9, %v1307_v2, %v1309_v61 }
 0x2e9   :  { %v1326_v38 = vadd.f32 %v1318_v13, %v1272_v7 }
 0x2eb   :  { %v1311_v35 = vpop.permute.xlu0 %1310  ;;  %v1367_v49 = vpop.permute.xlu1 %1366 }
 0x2ec   :  { %v1319_v15 = vsel %vm623_vm9, %v1309_v61, %v1311_v35 }
 0x2ef   :  { %v1369_v8 = vpop.permute.xlu0 %1368  ;;  %v1371_v12 = vpop.permute.xlu1 %1370 }
 0x2f0   :  { %v1374_v53 = vsel %vm690_vm10, %v1367_v49, %v1369_v8  ;;  %v1375_v62 = vsel %vm690_vm10, %v1369_v8, %v1371_v12 }
 0x2f1   :  { %v1382_v40 = vadd.f32 %v1374_v53, %v1328_v50  ;;  %v1383_v18 = vadd.f32 %v1375_v62, %v1329_v52 }
 0x2f3   :  { %v1361_v14 = vpop.permute.xlu0 %1360  ;;  %v1363_v39 = vpop.permute.xlu1 %1362 }
 0x2f4   :  { %v1372_v46 = vsel %vm690_vm10, %v1361_v14, %v1363_v39  ;;  %v1327_v14 = vadd.f32 %v1319_v15, %v1273_v51 }
 0x2f5   :  { %v1380_v33 = vadd.f32 %v1372_v46, %v1326_v38 }
 0x2f7   :  { %v1365_v11 = vpop.permute.xlu0 %1364  ;;  %v1421_v1 = vpop.permute.xlu1 %1420 }
 0x2f8   :  { %v1373_v2 = vsel %vm690_vm10, %v1363_v39, %v1365_v11 }
 0x2f9   :  { %v1381_v31 = vadd.f32 %v1373_v2, %v1327_v14 }
 0x2fb   :  { %v1423_v0 = vpop.permute.xlu0 %1422  ;;  %v1425_v19 = vpop.permute.xlu1 %1424 }
 0x2fc   :  { %v1428_v47 = vsel %vm757_vm15, %v1421_v1, %v1423_v0  ;;  %v1429_v25 = vsel %vm757_vm15, %v1423_v0, %v1425_v19 }
 0x2fd   :  { %v1436_v56 = vadd.f32 %v1428_v47, %v1382_v40  ;;  %v1437_v61 = vadd.f32 %v1429_v25, %v1383_v18 }
 0x2ff   :  { %v1415_v10 = vpop.permute.xlu0 %1414  ;;  %v1417_v48 = vpop.permute.xlu1 %1416 }
 0x300   :  { %v1426_v30 = vsel %vm757_vm15, %v1415_v10, %v1417_v48 }
 0x301   :  { %v1434_v1 = vadd.f32 %v1426_v30, %v1380_v33 }
 0x303   :  { %v1419_v34 = vpop.permute.xlu0 %1418  ;;  %v1475_v44 = vpop.permute.xlu1 %1474 }
 0x304   :  { %v1427_v35 = vsel %vm757_vm15, %v1417_v48, %v1419_v34 }
 0x305   :  { %v1435_v19 = vadd.f32 %v1427_v35, %v1381_v31 }
 0x307   :  { %v1477_v60 = vpop.permute.xlu0 %1476  ;;  %v1479_v16 = vpop.permute.xlu1 %1478 }
 0x308   :  { %v1482_v26 = vsel %vm824_vm8, %v1475_v44, %v1477_v60  ;;  %v1483_v8 = vsel %vm824_vm8, %v1477_v60, %v1479_v16 }
 0x309   :  { %v1490_v49 = vadd.f32 %v1482_v26, %v1436_v56  ;;  %v1491_v0 = vadd.f32 %v1483_v8, %v1437_v61 }
 0x30b   :  { %v1469_v12 = vpop.permute.xlu0 %1468  ;;  %v1471_v4 = vpop.permute.xlu1 %1470  ;;  %v1492_v9 = vsel %vm388_vm1, %v1490_v49, 0.0  ;;  %v1500_v59 = vsel %vm388_vm1, %v1491_v0, 0.0 }
 0x30c   :  { %v1480_v3 = vsel %vm824_vm8, %v1469_v12, %v1471_v4 }
 0x30d   :  { %v1488_v23 = vadd.f32 %v1480_v3, %v1434_v1 }
 0x30f   :  { %v1493_v27 = vadd.f32 %v1492_v9, %v1488_v23  ;;  %v1473_v39 = vpop.permute.xlu0 %1472 }
 0x310   :  { %v1481_v11 = vsel %vm824_vm8, %v1471_v4, %v1473_v39 }
 0x311   :  { %v1494_v5 = vrot.slane %v1493_v27, 4  ;;  %v1489_v10 = vadd.f32 %v1481_v11, %v1435_v19 }
 0x313   :  { %v1495_v55 = vadd.f32 %v1494_v5, %v1493_v27  ;;  %v1501_v24 = vadd.f32 %v1500_v59, %v1489_v10 }
 0x315   :  { %v1496_v42 = vrot.slane %v1495_v55, 2  ;;  %v1502_v48 = vrot.slane %v1501_v24, 4 }
 0x317   :  { %v1497_v54 = vadd.f32 %v1496_v42, %v1495_v55  ;;  %v1503_v17 = vadd.f32 %v1502_v48, %v1501_v24 }
 0x319   :  { %v1498_v28 = vrot.slane %v1497_v54, 1  ;;  %v1504_v36 = vrot.slane %v1503_v17, 2 }
 0x31b   :  { %v1499_v22 = vadd.f32 %v1498_v28, %v1497_v54  ;;  %v1505_v45 = vadd.f32 %v1504_v36, %v1503_v17 }
 0x31d   :  { %v1508_v6 = vmul.f32 %v1499_v22, %v2723_v21  ;;  %v1506_v58 = vrot.slane %v1505_v45, 1 }
 0x31f   :  { %v1510_v20 = vadd.f32 %v1508_v6, %v2737_v29  ;;  %v1507_v53 = vadd.f32 %v1506_v58, %v1505_v45 }
 0x321   :  { %v1512_v34 = vsub.f32 0.0, %v1510_v20  ;;  %v1509_v44 = vmul.f32 %v1507_v53, %v2723_v21 }
 0x323   :  { %v1514_v63 = vmul.f32 1.442695, %v1512_v34  ;;  %v1511_v50 = vadd.f32 %v1509_v44, %v2737_v29 }
 0x325   :  { %1641 = vpow2.f32 %v1514_v63  ;;  %v1513_v41 = vsub.f32 0.0, %v1511_v50 }
 0x327   :  { %v1516_v13 = vmul.f32 1.442695, %v1513_v41 }
 0x329   :  { %1643 = vpow2.f32 %v1516_v13 }
 0x332   :  { %v1642_v57 = vpop.eup %1641 }
 0x333   :  { %v1518_v37 = vadd.f32 1.0, %v1642_v57 }
 0x335   :  { %1645 = vrcp.f32 %v1518_v37 }
 0x336   :  { %v1644_v7 = vpop.eup %1643 }
 0x337   :  { %v1519_v47 = vadd.f32 1.0, %v1644_v7 }
 0x339   :  { %1647 = vrcp.f32 %v1519_v47 }
 0x342   :  { %v1646_v32 = vpop.eup %1645 }
 0x346   :  { %v1648_v40 = vpop.eup %1647 }
 0x347   :  { %v1524_v46 = vcombine.low %v1646_v32, %v1648_v40 }
 0x349   :  { %v1526_v21 = vmul.f32 %v1650_v43, %v1524_v46 }
 0x34b   :  { %1528 = vst [vmem:[#allocation7 + $0x8] sm:$0xff] %v1526_v21 }
 0x34c   :  { %1694 = shalt.err (!%p1691_p0)
}
 0x34d   :  { %1540 = dma.vmem_to_hbm [thread:$0]  %s1535_s12, 256, %s2966_s3, [#allocation4], %s1711_s1, %s1711_s1, %s1712_s20  }
 0x34e   :  { %1707 = dma.done.wait [#allocation4], 256  }
 0x34f   :  { %1708 = vsyncadd [#allocation4], 4294967040 }
 0x350   :  { %1544 = vsyncpa [#allocation3], 1 }
 0x351   :  { %1545 = vsyncpa [#allocation4], 1 }
 0x352   :  { %1546 = vsyncpa [#allocation5], 1 }

</bundles_post_ra>
